<compile_context>
chip_gen: v6e
topology: v6e:2x2x1
jax: 0.10.0
libtpu: 0.0.40
codegen_flags: <defaults>
</compile_context>

<pallas_src>
import jax
import jax.numpy as jnp
import numpy as np
from jax.experimental import pallas as pl
from jax.experimental.pallas import tpu as pltpu


# ---------------------------------------------------------------------------
# Kernel: b_tile batch elements per grid step, tiled over the point axis.
# ---------------------------------------------------------------------------
def _pointnet_kernel(x_ref,
                     w1_ref, b1_ref,
                     w2_ref, b2_ref,
                     w3_ref, b3_ref,
                     w4_ref, b4_ref,
                     w5_ref, b5_ref,
                     w6_ref, b6_ref,
                     w7_ref, b7_ref,
                     out_ref, acc_ref):
    """Grid = (batch_group, point_tile).
    x_ref: (b_tile, TILE_N, 3) f32; out_ref: (b_tile, out_pad); acc_ref: (b_tile, emb)."""
    n = pl.program_id(1)
    n_last = pl.num_programs(1) - 1
    b_tile, tile_n, _ = x_ref.shape
    emb = acc_ref.shape[1]
    rows = b_tile * tile_n

    @pl.when(n == 0)
    def _init():
        # Running-max accumulator for adaptive_max_pool1d(., 1).
        acc_ref[...] = jnp.full(acc_ref.shape, -jnp.inf, dtype=acc_ref.dtype)

    # Flatten (b_tile, tile_n) -> rows so every layer is one fat MXU pass.
    x = x_ref[...].reshape(rows, 3)                  # (rows, 3) f32

    # conv1 (+ folded bn1 scale) as 3 broadcast FMAs on the VPU, then bias+relu.
    w1 = w1_ref[...]                                 # (3, 64) f32, scale pre-folded
    h = (x[:, 0:1] * w1[0:1, :]
         + x[:, 1:2] * w1[1:2, :]
         + x[:, 2:3] * w1[2:3, :])                   # (rows, 64) f32
    h = jnp.maximum(h + b1_ref[...], 0.0).astype(jnp.bfloat16)

    def conv_bias_relu(h_bf16, w_ref, b_ref, out_bf16=True):
        # bf16 MXU matmul with f32 accumulation; BN scale already in the weights.
        y = jnp.dot(h_bf16, w_ref[...], preferred_element_type=jnp.float32)
        y = jnp.maximum(y + b_ref[...], 0.0)
        return y.astype(jnp.bfloat16) if out_bf16 else y

    h = conv_bias_relu(h, w2_ref, b2_ref)            # (rows, 64)  bf16
    h = conv_bias_relu(h, w3_ref, b3_ref)            # (rows, 64)  bf16
    h = conv_bias_relu(h, w4_ref, b4_ref)            # (rows, 128) bf16
    h = conv_bias_relu(h, w5_ref, b5_ref,
                       out_bf16=False)               # (rows, emb) f32 for the pool

    # Running max over points, per batch row.
    acc_ref[...] = jnp.maximum(
        acc_ref[...],
        jnp.max(h.reshape(b_tile, tile_n, emb), axis=1))

    @pl.when(n == n_last)
    def _head_epilogue():
        pooled = acc_ref[...]                        # (b_tile, emb) f32
        g = jnp.dot(pooled.astype(jnp.bfloat16), w6_ref[...],
                    preferred_element_type=jnp.float32)          # (b_tile, 512)
        g = jnp.maximum(g + b6_ref[...], 0.0)
        # TODO(synk): nn.Dropout is identity in eval mode; training-mode dropout not implemented.
        logits = jnp.dot(g.astype(jnp.bfloat16), w7_ref[...],
                         preferred_element_type=jnp.float32) + b7_ref[...]
        out_ref[...] = logits                        # (b_tile, out_pad), lane-dense store


# ---------------------------------------------------------------------------
# Wrapper
# ---------------------------------------------------------------------------
def _round_up(x, m):
    return ((x + m - 1) // m) * m


def _choose_b_tile(b, max_b=8):
    """Largest divisor of B <= max_b (folds batch rows into each MXU pass)."""
    for cand in range(min(b, max_b), 0, -1):
        if b % cand == 0:
            return cand
    return 1


def _choose_tile_n(n, b_tile, max_rows=4096):
    """Largest point tile (multiple of 8, dividing N) keeping b_tile*tile_n <= max_rows."""
    target = max(8, max_rows // max(b_tile, 1))
    if n <= target:
        return n
    start = target - (target % 8)
    for cand in range(start, 7, -8):
        if n % cand == 0:
            return cand
    return n  # fall back to a single full-N tile


def pointnet_forward(x_ncw, params, tile_n=None, b_tile=None):
    """x_ncw: (B, 3, N) float32, matching the PyTorch NCW convention."""
    x = jnp.transpose(x_ncw, (0, 2, 1)).astype(jnp.float32)     # (B, N, 3)
    B, N, _ = x.shape
    emb = params["w5"].shape[1]
    out_ch = params["w7"].shape[1]
    out_pad = _round_up(out_ch, 128)                            # lane-dense output

    if b_tile is None:
        b_tile = _choose_b_tile(B)
    assert B % b_tile == 0, (B, b_tile)
    if tile_n is None:
        tile_n = _choose_tile_n(N, b_tile)
    assert N % tile_n == 0, (N, tile_n)
    n_bgroups = B // b_tile
    n_tiles = N // tile_n

    # Parameter prep (once, wrapper side):
    #  - BN scale folded into each weight matrix (before the bf16 cast)
    #  - bf16 weights for all MXU matmuls (f32 accumulation in-kernel)
    #  - conv1 weight kept f32 (VPU path), scale folded in too
    #  - per-layer BN bias kept as a (1, C) f32 operand
    #  - linear2 weight/bias zero-padded to 128 output lanes
    w1 = (params["w1"] * params["s1"]).astype(jnp.float32)      # (3, 64)
    wbf = {i: (params[f"w{i}"] * params[f"s{i}"]).astype(jnp.bfloat16)
           for i in (2, 3, 4, 5, 6)}
    bias = {i: params[f"b{i}"].astype(jnp.float32) for i in (1, 2, 3, 4, 5, 6)}
    w7p = jnp.zeros((params["w7"].shape[0], out_pad), jnp.bfloat16)
    w7p = w7p.at[:, :out_ch].set(params["w7"].astype(jnp.bfloat16))
    b7p = jnp.zeros((1, out_pad), jnp.float32).at[:, :out_ch].set(params["b7"])

    operands = (x,
                w1, bias[1],
                wbf[2], bias[2],
                wbf[3], bias[3],
                wbf[4], bias[4],
                wbf[5], bias[5],
                wbf[6], bias[6],
                w7p, b7p)

    def const_spec(a):
        return pl.BlockSpec(a.shape, lambda b, n, _nd=a.ndim: (0,) * _nd)

    in_specs = ([pl.BlockSpec((b_tile, tile_n, 3), lambda b, n: (b, n, 0))]
                + [const_spec(a) for a in operands[1:]])

    # Output as (n_bgroups, b_tile, out_pad): block equals full trailing dims,
    # valid for any b_tile; wrapper reshapes back to (B, out_pad).
    out_specs = pl.BlockSpec((pl.Squeezed(), b_tile, out_pad),
                             lambda b, n: (b, 0, 0))

    flops = int(2 * B * N * (3 * 64 + 64 * 64 + 64 * 64 + 64 * 128 + 128 * emb)
                + 2 * B * (emb * 512 + 512 * out_pad))
    bytes_accessed = int(x.size * x.dtype.itemsize
                         + sum(a.size * a.dtype.itemsize for a in operands[1:])
                         + B * out_pad * 4)

    logits_padded = pl.pallas_call(
        _pointnet_kernel,
        out_shape=jax.ShapeDtypeStruct((n_bgroups, b_tile, out_pad), jnp.float32),
        grid=(n_bgroups, n_tiles),
        in_specs=in_specs,
        out_specs=out_specs,
        scratch_shapes=[pltpu.VMEM((b_tile, emb), jnp.float32)],
        compiler_params=pltpu.CompilerParams(
            dimension_semantics=("parallel", "arbitrary"),
            vmem_limit_bytes=32 * 1024 * 1024),
        cost_estimate=pl.CostEstimate(flops=flops, transcendentals=0,
                                      bytes_accessed=bytes_accessed),
    )(*operands)

    return logits_padded.reshape(B, out_pad)[:, :out_ch]


# ---------------------------------------------------------------------------
# Deterministic parameter construction (synthetic; matches module shapes)
# ---------------------------------------------------------------------------
def make_params(key, emb_dims=128, output_channels=40):
    dims = [(3, 64), (64, 64), (64, 64), (64, 128), (128, emb_dims)]
    params = {}
    keys = jax.random.split(key, 32)
    ki = 0

    def fold_bn(gamma, beta, mean, var, eps=1e-5):
        scale = gamma / jnp.sqrt(var + eps)
        bias = beta - mean * scale
        return scale[None, :], bias[None, :]

    for i, (cin, cout) in enumerate(dims, start=1):
        params[f"w{i}"] = (jax.random.normal(keys[ki], (cin, cout), jnp.float32)
                           * (1.0 / np.sqrt(cin))); ki += 1
        gamma = 0.5 + jax.random.uniform(keys[ki], (cout,), jnp.float32); ki += 1
        beta = 0.1 * jax.random.normal(keys[ki], (cout,), jnp.float32); ki += 1
        mean = jnp.zeros((cout,), jnp.float32)
        var = jnp.ones((cout,), jnp.float32)
        params[f"s{i}"], params[f"b{i}"] = fold_bn(gamma, beta, mean, var)

    # linear1: (emb_dims -> 512, no bias) + bn6
    params["w6"] = (jax.random.normal(keys[ki], (emb_dims, 512), jnp.float32)
                    * (1.0 / np.sqrt(emb_dims))); ki += 1
    gamma = 0.5 + jax.random.uniform(keys[ki], (512,), jnp.float32); ki += 1
    beta = 0.1 * jax.random.normal(keys[ki], (512,), jnp.float32); ki += 1
    params["s6"], params["b6"] = fold_bn(gamma, beta,
                                         jnp.zeros((512,), jnp.float32),
                                         jnp.ones((512,), jnp.float32))

    # linear2: (512 -> output_channels, with bias)
    params["w7"] = (jax.random.normal(keys[ki], (512, output_channels), jnp.float32)
                    * (1.0 / np.sqrt(512))); ki += 1
    params["b7"] = 0.1 * jax.random.normal(keys[ki], (1, output_channels), jnp.float32)
    return params


def reference_forward(x_ncw, p):
    """Plain-JAX reference mirroring the kernel numerics (BN scale folded into
    weights before bf16 cast, bf16 matmul inputs, f32 accumulation, conv1 in f32)."""
    h = jnp.transpose(x_ncw, (0, 2, 1)).astype(jnp.float32)
    w1 = p["w1"] * p["s1"]
    h = jnp.einsum("bnc,cd->bnd", h, w1) + p["b1"]
    h = jnp.maximum(h, 0.0)
    for i in range(2, 6):
        w = (p[f"w{i}"] * p[f"s{i}"]).astype(jnp.bfloat16)
        h = jnp.einsum("bnc,cd->bnd", h.astype(jnp.bfloat16), w,
                       preferred_element_type=jnp.float32) + p[f"b{i}"]
        h = jnp.maximum(h, 0.0)
    pooled = jnp.max(h, axis=1)                      # adaptive_max_pool1d(.,1).squeeze()
    w6 = (p["w6"] * p["s6"]).astype(jnp.bfloat16)
    g = jnp.dot(pooled.astype(jnp.bfloat16), w6,
                preferred_element_type=jnp.float32) + p["b6"]
    g = jnp.maximum(g, 0.0)
    return (jnp.dot(g.astype(jnp.bfloat16), p["w7"].astype(jnp.bfloat16),
                    preferred_element_type=jnp.float32) + p["b7"])


# ---------------------------------------------------------------------------
if __name__ == "__main__":
    key = jax.random.PRNGKey(0)
    k_x, k_p = jax.random.split(key)

    B, N = 2, 256
    emb_dims, output_channels = 128, 40

    x = jax.random.normal(k_x, (B, 3, N), jnp.float32)     # NCW, like torch Conv1d input
    params = make_params(k_p, emb_dims=emb_dims, output_channels=output_channels)

    # tile_n=128 -> 2 point tiles per batch group: exercises the running-max
    # accumulator and the fused head epilogue at the last tile; b_tile=2 folds
    # the whole batch into one grid row.
    out = pointnet_forward(x, params, tile_n=128)
    out = jax.block_until_ready(out)

    ref = jax.block_until_ready(reference_forward(x, params))
    assert out.shape == (B, output_channels), out.shape
    np.testing.assert_allclose(np.asarray(out), np.asarray(ref), rtol=1e-2, atol=1e-2)

    print("KERNEL_OK")
</pallas_src>

<mosaic_0001>
module attributes {stable_mosaic.version = 11 : i64} {
  func.func @_pointnet_kernel(%arg0: i32, %arg1: i32, %arg2: memref<2x128x3xf32, #tpu.memory_space<vmem>>, %arg3: memref<3x64xf32, #tpu.memory_space<vmem>>, %arg4: memref<1x64xf32, #tpu.memory_space<vmem>>, %arg5: memref<64x64xbf16, #tpu.memory_space<vmem>>, %arg6: memref<1x64xf32, #tpu.memory_space<vmem>>, %arg7: memref<64x64xbf16, #tpu.memory_space<vmem>>, %arg8: memref<1x64xf32, #tpu.memory_space<vmem>>, %arg9: memref<64x128xbf16, #tpu.memory_space<vmem>>, %arg10: memref<1x128xf32, #tpu.memory_space<vmem>>, %arg11: memref<128x128xbf16, #tpu.memory_space<vmem>>, %arg12: memref<1x128xf32, #tpu.memory_space<vmem>>, %arg13: memref<128x512xbf16, #tpu.memory_space<vmem>>, %arg14: memref<1x512xf32, #tpu.memory_space<vmem>>, %arg15: memref<512x128xbf16, #tpu.memory_space<vmem>>, %arg16: memref<1x128xf32, #tpu.memory_space<vmem>>, %arg17: memref<1x2x128xf32, #tpu.memory_space<vmem>>, %arg18: memref<2x128xf32, #tpu.memory_space<vmem>>) attributes {dimension_semantics = [#tpu.dimension_semantics<parallel>, #tpu.dimension_semantics<arbitrary>], iteration_bounds = array<i64: 1, 2>, scalar_prefetch = 0 : i64, scratch_operands = 1 : i64, tpu.core_type = #tpu.core_type<tc>, window_params = [{transform_indices = @transform_0, window_bounds = array<i64: 2, 128, 3>}, {pipeline_mode = #tpu.pipeline_mode<synchronous>, transform_indices = @transform_1, window_bounds = array<i64: 3, 64>}, {pipeline_mode = #tpu.pipeline_mode<synchronous>, transform_indices = @transform_2, window_bounds = array<i64: 1, 64>}, {pipeline_mode = #tpu.pipeline_mode<synchronous>, transform_indices = @transform_3, window_bounds = array<i64: 64, 64>}, {pipeline_mode = #tpu.pipeline_mode<synchronous>, transform_indices = @transform_4, window_bounds = array<i64: 1, 64>}, {pipeline_mode = #tpu.pipeline_mode<synchronous>, transform_indices = @transform_5, window_bounds = array<i64: 64, 64>}, {pipeline_mode = #tpu.pipeline_mode<synchronous>, transform_indices = @transform_6, window_bounds = array<i64: 1, 64>}, {pipeline_mode = #tpu.pipeline_mode<synchronous>, transform_indices = @transform_7, window_bounds = array<i64: 64, 128>}, {pipeline_mode = #tpu.pipeline_mode<synchronous>, transform_indices = @transform_8, window_bounds = array<i64: 1, 128>}, {pipeline_mode = #tpu.pipeline_mode<synchronous>, transform_indices = @transform_9, window_bounds = array<i64: 128, 128>}, {pipeline_mode = #tpu.pipeline_mode<synchronous>, transform_indices = @transform_10, window_bounds = array<i64: 1, 128>}, {pipeline_mode = #tpu.pipeline_mode<synchronous>, transform_indices = @transform_11, window_bounds = array<i64: 128, 512>}, {pipeline_mode = #tpu.pipeline_mode<synchronous>, transform_indices = @transform_12, window_bounds = array<i64: 1, 512>}, {pipeline_mode = #tpu.pipeline_mode<synchronous>, transform_indices = @transform_13, window_bounds = array<i64: 512, 128>}, {pipeline_mode = #tpu.pipeline_mode<synchronous>, transform_indices = @transform_14, window_bounds = array<i64: 1, 128>}, {transform_indices = @transform_15, window_bounds = array<i64: 1, 2, 128>}]} {
    %c0_i32 = arith.constant 0 : i32
    %0 = arith.cmpi eq, %arg1, %c0_i32 : i32
    %1 = arith.extui %0 : i1 to i32
    %c0_i32_0 = arith.constant 0 : i32
    %2 = arith.cmpi ne, %1, %c0_i32_0 : i32
    scf.if %2 {
      %cst_37 = arith.constant 0xFF800000 : f32
      %68 = vector.broadcast %cst_37 : f32 to vector<2x128xf32>
      %c0_38 = arith.constant 0 : index
      %c0_39 = arith.constant 0 : index
      %69 = vector.load %arg18[%c0_38, %c0_39] : memref<2x128xf32, #tpu.memory_space<vmem>>, vector<2x128xf32>
      tpu.vector_store %arg18[%c0_38, %c0_39], %68 {strides = array<i32>} : memref<2x128xf32, #tpu.memory_space<vmem>>, vector<2x128xf32>,
    } else {
    }
    %c0 = arith.constant 0 : index
    %c0_1 = arith.constant 0 : index
    %c0_2 = arith.constant 0 : index
    %3 = vector.load %arg2[%c0, %c0_1, %c0_2] : memref<2x128x3xf32, #tpu.memory_space<vmem>>, vector<2x128x3xf32>
    %4 = vector.shape_cast %3 : vector<2x128x3xf32> to vector<256x3xf32>
    %c0_3 = arith.constant 0 : index
    %c0_4 = arith.constant 0 : index
    %5 = vector.load %arg3[%c0_3, %c0_4] : memref<3x64xf32, #tpu.memory_space<vmem>>, vector<3x64xf32>
    %6 = vector.extract_strided_slice %4 {offsets = [0, 0], sizes = [256, 1], strides = [1, 1]} : vector<256x3xf32> to vector<256x1xf32>
    %7 = vector.extract_strided_slice %5 {offsets = [0, 0], sizes = [1, 64], strides = [1, 1]} : vector<3x64xf32> to vector<1x64xf32>
    %8 = vector.broadcast %6 : vector<256x1xf32> to vector<256x64xf32>
    %9 = vector.broadcast %7 : vector<1x64xf32> to vector<256x64xf32>
    %10 = arith.mulf %8, %9 : vector<256x64xf32>
    %11 = vector.extract_strided_slice %4 {offsets = [0, 1], sizes = [256, 1], strides = [1, 1]} : vector<256x3xf32> to vector<256x1xf32>
    %12 = vector.extract_strided_slice %5 {offsets = [1, 0], sizes = [1, 64], strides = [1, 1]} : vector<3x64xf32> to vector<1x64xf32>
    %13 = vector.broadcast %11 : vector<256x1xf32> to vector<256x64xf32>
    %14 = vector.broadcast %12 : vector<1x64xf32> to vector<256x64xf32>
    %15 = arith.mulf %13, %14 : vector<256x64xf32>
    %16 = arith.addf %10, %15 : vector<256x64xf32>
    %17 = vector.extract_strided_slice %4 {offsets = [0, 2], sizes = [256, 1], strides = [1, 1]} : vector<256x3xf32> to vector<256x1xf32>
    %18 = vector.extract_strided_slice %5 {offsets = [2, 0], sizes = [1, 64], strides = [1, 1]} : vector<3x64xf32> to vector<1x64xf32>
    %19 = vector.broadcast %17 : vector<256x1xf32> to vector<256x64xf32>
    %20 = vector.broadcast %18 : vector<1x64xf32> to vector<256x64xf32>
    %21 = arith.mulf %19, %20 : vector<256x64xf32>
    %22 = arith.addf %16, %21 : vector<256x64xf32>
    %c0_5 = arith.constant 0 : index
    %c0_6 = arith.constant 0 : index
    %23 = vector.load %arg4[%c0_5, %c0_6] : memref<1x64xf32, #tpu.memory_space<vmem>>, vector<1x64xf32>
    %24 = vector.broadcast %23 : vector<1x64xf32> to vector<256x64xf32>
    %25 = arith.addf %22, %24 : vector<256x64xf32>
    %cst = arith.constant 0.000000e+00 : f32
    %26 = vector.broadcast %cst : f32 to vector<256x64xf32>
    %27 = arith.maximumf %25, %26 : vector<256x64xf32>
    %28 = arith.truncf %27 : vector<256x64xf32> to vector<256x64xbf16>
    %c0_7 = arith.constant 0 : index
    %c0_8 = arith.constant 0 : index
    %29 = vector.load %arg5[%c0_7, %c0_8] : memref<64x64xbf16, #tpu.memory_space<vmem>>, vector<64x64xbf16>
    %cst_9 = arith.constant dense<0.000000e+00> : vector<256x64xf32>
    %30 = tpu.matmul %28, %29, %cst_9 {dimension_numbers = #tpu.dot_dimension_numbers<[1], [0], [0], [1], [0, 0, 1, 1], [], []>} : vector<256x64xbf16>, vector<64x64xbf16>, vector<256x64xf32> -> vector<256x64xf32>
    %c0_10 = arith.constant 0 : index
    %c0_11 = arith.constant 0 : index
    %31 = vector.load %arg6[%c0_10, %c0_11] : memref<1x64xf32, #tpu.memory_space<vmem>>, vector<1x64xf32>
    %32 = vector.broadcast %31 : vector<1x64xf32> to vector<256x64xf32>
    %33 = arith.addf %30, %32 : vector<256x64xf32>
    %cst_12 = arith.constant 0.000000e+00 : f32
    %34 = vector.broadcast %cst_12 : f32 to vector<256x64xf32>
    %35 = arith.maximumf %33, %34 : vector<256x64xf32>
    %36 = arith.truncf %35 : vector<256x64xf32> to vector<256x64xbf16>
    %c0_13 = arith.constant 0 : index
    %c0_14 = arith.constant 0 : index
    %37 = vector.load %arg7[%c0_13, %c0_14] : memref<64x64xbf16, #tpu.memory_space<vmem>>, vector<64x64xbf16>
    %cst_15 = arith.constant dense<0.000000e+00> : vector<256x64xf32>
    %38 = tpu.matmul %36, %37, %cst_15 {dimension_numbers = #tpu.dot_dimension_numbers<[1], [0], [0], [1], [0, 0, 1, 1], [], []>} : vector<256x64xbf16>, vector<64x64xbf16>, vector<256x64xf32> -> vector<256x64xf32>
    %c0_16 = arith.constant 0 : index
    %c0_17 = arith.constant 0 : index
    %39 = vector.load %arg8[%c0_16, %c0_17] : memref<1x64xf32, #tpu.memory_space<vmem>>, vector<1x64xf32>
    %40 = vector.broadcast %39 : vector<1x64xf32> to vector<256x64xf32>
    %41 = arith.addf %38, %40 : vector<256x64xf32>
    %cst_18 = arith.constant 0.000000e+00 : f32
    %42 = vector.broadcast %cst_18 : f32 to vector<256x64xf32>
    %43 = arith.maximumf %41, %42 : vector<256x64xf32>
    %44 = arith.truncf %43 : vector<256x64xf32> to vector<256x64xbf16>
    %c0_19 = arith.constant 0 : index
    %c0_20 = arith.constant 0 : index
    %45 = vector.load %arg9[%c0_19, %c0_20] : memref<64x128xbf16, #tpu.memory_space<vmem>>, vector<64x128xbf16>
    %cst_21 = arith.constant dense<0.000000e+00> : vector<256x128xf32>
    %46 = tpu.matmul %44, %45, %cst_21 {dimension_numbers = #tpu.dot_dimension_numbers<[1], [0], [0], [1], [0, 0, 1, 1], [], []>} : vector<256x64xbf16>, vector<64x128xbf16>, vector<256x128xf32> -> vector<256x128xf32>
    %c0_22 = arith.constant 0 : index
    %c0_23 = arith.constant 0 : index
    %47 = vector.load %arg10[%c0_22, %c0_23] : memref<1x128xf32, #tpu.memory_space<vmem>>, vector<1x128xf32>
    %48 = vector.broadcast %47 : vector<1x128xf32> to vector<256x128xf32>
    %49 = arith.addf %46, %48 : vector<256x128xf32>
    %cst_24 = arith.constant 0.000000e+00 : f32
    %50 = vector.broadcast %cst_24 : f32 to vector<256x128xf32>
    %51 = arith.maximumf %49, %50 : vector<256x128xf32>
    %52 = arith.truncf %51 : vector<256x128xf32> to vector<256x128xbf16>
    %c0_25 = arith.constant 0 : index
    %c0_26 = arith.constant 0 : index
    %53 = vector.load %arg11[%c0_25, %c0_26] : memref<128x128xbf16, #tpu.memory_space<vmem>>, vector<128x128xbf16>
    %cst_27 = arith.constant dense<0.000000e+00> : vector<256x128xf32>
    %54 = tpu.matmul %52, %53, %cst_27 {dimension_numbers = #tpu.dot_dimension_numbers<[1], [0], [0], [1], [0, 0, 1, 1], [], []>} : vector<256x128xbf16>, vector<128x128xbf16>, vector<256x128xf32> -> vector<256x128xf32>
    %c0_28 = arith.constant 0 : index
    %c0_29 = arith.constant 0 : index
    %55 = vector.load %arg12[%c0_28, %c0_29] : memref<1x128xf32, #tpu.memory_space<vmem>>, vector<1x128xf32>
    %56 = vector.broadcast %55 : vector<1x128xf32> to vector<256x128xf32>
    %57 = arith.addf %54, %56 : vector<256x128xf32>
    %cst_30 = arith.constant 0.000000e+00 : f32
    %58 = vector.broadcast %cst_30 : f32 to vector<256x128xf32>
    %59 = arith.maximumf %57, %58 : vector<256x128xf32>
    %c0_31 = arith.constant 0 : index
    %c0_32 = arith.constant 0 : index
    %60 = vector.load %arg18[%c0_31, %c0_32] : memref<2x128xf32, #tpu.memory_space<vmem>>, vector<2x128xf32>
    %61 = vector.shape_cast %59 : vector<256x128xf32> to vector<2x128x128xf32>
    %cst_33 = arith.constant dense<0xFF800000> : vector<2x128xf32>
    %62 = vector.multi_reduction <maximumf>, %61, %cst_33 [1] : vector<2x128x128xf32> to vector<2x128xf32>
    %63 = arith.maximumf %60, %62 : vector<2x128xf32>
    %c0_34 = arith.constant 0 : index
    %c0_35 = arith.constant 0 : index
    %64 = vector.load %arg18[%c0_34, %c0_35] : memref<2x128xf32, #tpu.memory_space<vmem>>, vector<2x128xf32>
    tpu.vector_store %arg18[%c0_34, %c0_35], %63 {strides = array<i32>} : memref<2x128xf32, #tpu.memory_space<vmem>>, vector<2x128xf32>,
    %c1_i32 = arith.constant 1 : i32
    %65 = arith.cmpi eq, %arg1, %c1_i32 : i32
    %66 = arith.extui %65 : i1 to i32
    %c0_i32_36 = arith.constant 0 : i32
    %67 = arith.cmpi ne, %66, %c0_i32_36 : i32
    scf.if %67 {
      %c0_37 = arith.constant 0 : index
      %c0_38 = arith.constant 0 : index
      %68 = vector.load %arg18[%c0_37, %c0_38] : memref<2x128xf32, #tpu.memory_space<vmem>>, vector<2x128xf32>
      %69 = arith.truncf %68 : vector<2x128xf32> to vector<2x128xbf16>
      %c0_39 = arith.constant 0 : index
      %c0_40 = arith.constant 0 : index
      %70 = vector.load %arg13[%c0_39, %c0_40] : memref<128x512xbf16, #tpu.memory_space<vmem>>, vector<128x512xbf16>
      %cst_41 = arith.constant dense<0.000000e+00> : vector<2x512xf32>
      %71 = tpu.matmul %69, %70, %cst_41 {dimension_numbers = #tpu.dot_dimension_numbers<[1], [0], [0], [1], [0, 0, 1, 1], [], []>} : vector<2x128xbf16>, vector<128x512xbf16>, vector<2x512xf32> -> vector<2x512xf32>
      %c0_42 = arith.constant 0 : index
      %c0_43 = arith.constant 0 : index
      %72 = vector.load %arg14[%c0_42, %c0_43] : memref<1x512xf32, #tpu.memory_space<vmem>>, vector<1x512xf32>
      %73 = vector.broadcast %72 : vector<1x512xf32> to vector<2x512xf32>
      %74 = arith.addf %71, %73 : vector<2x512xf32>
      %cst_44 = arith.constant 0.000000e+00 : f32
      %75 = vector.broadcast %cst_44 : f32 to vector<2x512xf32>
      %76 = arith.maximumf %74, %75 : vector<2x512xf32>
      %77 = arith.truncf %76 : vector<2x512xf32> to vector<2x512xbf16>
      %c0_45 = arith.constant 0 : index
      %c0_46 = arith.constant 0 : index
      %78 = vector.load %arg15[%c0_45, %c0_46] : memref<512x128xbf16, #tpu.memory_space<vmem>>, vector<512x128xbf16>
      %cst_47 = arith.constant dense<0.000000e+00> : vector<2x128xf32>
      %79 = tpu.matmul %77, %78, %cst_47 {dimension_numbers = #tpu.dot_dimension_numbers<[1], [0], [0], [1], [0, 0, 1, 1], [], []>} : vector<2x512xbf16>, vector<512x128xbf16>, vector<2x128xf32> -> vector<2x128xf32>
      %c0_48 = arith.constant 0 : index
      %c0_49 = arith.constant 0 : index
      %80 = vector.load %arg16[%c0_48, %c0_49] : memref<1x128xf32, #tpu.memory_space<vmem>>, vector<1x128xf32>
      %81 = vector.broadcast %80 : vector<1x128xf32> to vector<2x128xf32>
      %82 = arith.addf %79, %81 : vector<2x128xf32>
      %c0_50 = arith.constant 0 : index
      %c0_51 = arith.constant 0 : index
      %c0_52 = arith.constant 0 : index
      %83 = vector.load %arg17[%c0_50, %c0_51, %c0_52] : memref<1x2x128xf32, #tpu.memory_space<vmem>>, vector<1x2x128xf32>
      %84 = vector.shape_cast %83 : vector<1x2x128xf32> to vector<2x128xf32>
      %85 = vector.shape_cast %82 : vector<2x128xf32> to vector<1x2x128xf32>
      tpu.vector_store %arg17[%c0_50, %c0_51, %c0_52], %85 {strides = array<i32>} : memref<1x2x128xf32, #tpu.memory_space<vmem>>, vector<1x2x128xf32>,
    } else {
    }
    return
  }
  func.func @transform_0(%arg0: i32, %arg1: i32) -> (i32, i32, i32) {
    %c0_i32 = arith.constant 0 : i32
    %c0_i32_0 = arith.constant 0 : i32
    return %arg0, %arg1, %c0_i32 : i32, i32, i32
  }
  func.func @transform_1(%arg0: i32, %arg1: i32) -> (i32, i32) {
    %c0_i32 = arith.constant 0 : i32
    %c0_i32_0 = arith.constant 0 : i32
    %c0_i32_1 = arith.constant 0 : i32
    return %c0_i32, %c0_i32_0 : i32, i32
  }
  func.func @transform_2(%arg0: i32, %arg1: i32) -> (i32, i32) {
    %c0_i32 = arith.constant 0 : i32
    %c0_i32_0 = arith.constant 0 : i32
    %c0_i32_1 = arith.constant 0 : i32
    return %c0_i32, %c0_i32_0 : i32, i32
  }
  func.func @transform_3(%arg0: i32, %arg1: i32) -> (i32, i32) {
    %c0_i32 = arith.constant 0 : i32
    %c0_i32_0 = arith.constant 0 : i32
    %c0_i32_1 = arith.constant 0 : i32
    return %c0_i32, %c0_i32_0 : i32, i32
  }
  func.func @transform_4(%arg0: i32, %arg1: i32) -> (i32, i32) {
    %c0_i32 = arith.constant 0 : i32
    %c0_i32_0 = arith.constant 0 : i32
    %c0_i32_1 = arith.constant 0 : i32
    return %c0_i32, %c0_i32_0 : i32, i32
  }
  func.func @transform_5(%arg0: i32, %arg1: i32) -> (i32, i32) {
    %c0_i32 = arith.constant 0 : i32
    %c0_i32_0 = arith.constant 0 : i32
    %c0_i32_1 = arith.constant 0 : i32
    return %c0_i32, %c0_i32_0 : i32, i32
  }
  func.func @transform_6(%arg0: i32, %arg1: i32) -> (i32, i32) {
    %c0_i32 = arith.constant 0 : i32
    %c0_i32_0 = arith.constant 0 : i32
    %c0_i32_1 = arith.constant 0 : i32
    return %c0_i32, %c0_i32_0 : i32, i32
  }
  func.func @transform_7(%arg0: i32, %arg1: i32) -> (i32, i32) {
    %c0_i32 = arith.constant 0 : i32
    %c0_i32_0 = arith.constant 0 : i32
    %c0_i32_1 = arith.constant 0 : i32
    return %c0_i32, %c0_i32_0 : i32, i32
  }
  func.func @transform_8(%arg0: i32, %arg1: i32) -> (i32, i32) {
    %c0_i32 = arith.constant 0 : i32
    %c0_i32_0 = arith.constant 0 : i32
    %c0_i32_1 = arith.constant 0 : i32
    return %c0_i32, %c0_i32_0 : i32, i32
  }
  func.func @transform_9(%arg0: i32, %arg1: i32) -> (i32, i32) {
    %c0_i32 = arith.constant 0 : i32
    %c0_i32_0 = arith.constant 0 : i32
    %c0_i32_1 = arith.constant 0 : i32
    return %c0_i32, %c0_i32_0 : i32, i32
  }
  func.func @transform_10(%arg0: i32, %arg1: i32) -> (i32, i32) {
    %c0_i32 = arith.constant 0 : i32
    %c0_i32_0 = arith.constant 0 : i32
    %c0_i32_1 = arith.constant 0 : i32
    return %c0_i32, %c0_i32_0 : i32, i32
  }
  func.func @transform_11(%arg0: i32, %arg1: i32) -> (i32, i32) {
    %c0_i32 = arith.constant 0 : i32
    %c0_i32_0 = arith.constant 0 : i32
    %c0_i32_1 = arith.constant 0 : i32
    return %c0_i32, %c0_i32_0 : i32, i32
  }
  func.func @transform_12(%arg0: i32, %arg1: i32) -> (i32, i32) {
    %c0_i32 = arith.constant 0 : i32
    %c0_i32_0 = arith.constant 0 : i32
    %c0_i32_1 = arith.constant 0 : i32
    return %c0_i32, %c0_i32_0 : i32, i32
  }
  func.func @transform_13(%arg0: i32, %arg1: i32) -> (i32, i32) {
    %c0_i32 = arith.constant 0 : i32
    %c0_i32_0 = arith.constant 0 : i32
    %c0_i32_1 = arith.constant 0 : i32
    return %c0_i32, %c0_i32_0 : i32, i32
  }
  func.func @transform_14(%arg0: i32, %arg1: i32) -> (i32, i32) {
    %c0_i32 = arith.constant 0 : i32
    %c0_i32_0 = arith.constant 0 : i32
    %c0_i32_1 = arith.constant 0 : i32
    return %c0_i32, %c0_i32_0 : i32, i32
  }
  func.func @transform_15(%arg0: i32, %arg1: i32) -> (i32, i32, i32) {
    %c0_i32 = arith.constant 0 : i32
    %c0_i32_0 = arith.constant 0 : i32
    %c0_i32_1 = arith.constant 0 : i32
    return %arg0, %c0_i32, %c0_i32_0 : i32, i32, i32
  }
}

</mosaic_0001>

<bundles_post_ra>
// kernel: tpu_custom_call.1
= control target key start
LH: loop header
LB: loop body
LE: loop exit
PB: predicated region body
PF: predicated region fallthrough
CT: control target
= control target key end

     0   :  { %s5388_s0 = inlined_call_operand.vmem [shape: f32[2,256,3], index: 0, kind: input, shape index: {}]   ;;  %s5389_s1 = inlined_call_operand.vmem [shape: f32[3,64], index: 1, kind: input, shape index: {}]   ;;  %s5390_s2 = inlined_call_operand.vmem [shape: f32[1,64], index: 2, kind: input, shape index: {}]   ;;  %s5391_s3 = inlined_call_operand.hbm [shape: bf16[64,64], index: 3, kind: input, shape index: {}]   ;;  %s5392_s4 = inlined_call_operand.vmem [shape: f32[1,64], index: 4, kind: input, shape index: {}]   ;;  %s5393_s5 = inlined_call_operand.hbm [shape: bf16[64,64], index: 5, kind: input, shape index: {}]   ;;  %s5394_s6 = inlined_call_operand.vmem [shape: f32[1,64], index: 6, kind: input, shape index: {}]   ;;  %s5395_s7 = inlined_call_operand.hbm [shape: bf16[64,128], index: 7, kind: input, shape index: {}]   ;;  %s5396_s8 = inlined_call_operand.vmem [shape: f32[1,128], index: 8, kind: input, shape index: {}]   ;;  %s5397_s9 = inlined_call_operand.hbm [shape: bf16[128,128], index: 9, kind: input, shape index: {}]   ;;  %s5398_s10 = inlined_call_operand.vmem [shape: f32[1,128], index: 10, kind: input, shape index: {}]   ;;  %s5399_s11 = inlined_call_operand.vmem [shape: bf16[128,512], index: 11, kind: input, shape index: {}]   ;;  %s5400_s12 = inlined_call_operand.vmem [shape: f32[1,512], index: 12, kind: input, shape index: {}]   ;;  %s5401_s13 = inlined_call_operand.vmem [shape: bf16[512,128], index: 13, kind: input, shape index: {}]   ;;  %s5402_s14 = inlined_call_operand.vmem [shape: f32[1,128], index: 14, kind: input, shape index: {}]   ;;  %s5403_s15 = inlined_call_operand.hbm [shape: f32[1,2,128], index: 15, kind: output, shape index: {}]  }
   0x1   :  { %5407 = sst [smem:[#allocation19_spill]] %s5400_s12 }
   0x2   :  { %5408 = sst [smem:[#allocation20_spill]] %s5401_s13 }
   0x3   :  { %5409 = sst [smem:[#allocation21_spill]] %s5402_s14 }
   0x4   :  { %5410 = sst [smem:[#allocation22_spill]] %s5403_s15 }
   0x5   :  { %20 = vsyncpa [#allocation5], 0 }
   0x6   :  { %21 = vsyncpa [#allocation8], 0 }
   0x7   :  { %22 = vsyncpa [#allocation11], 0 }
   0x8   :  { %23 = vsyncpa [#allocation6], 0  ;;  %s4376_s18 = smov 0   ;;  %s4378_s19 = smov 0  }
   0x9   :  { %s4380_s20 = smov 0   ;;  %s4382_s21 = smov 0  }
   0xa   :  { %s4384_s22 = smov 0  }
   0xb LB: > { %s5404_s23 = sadd.s32 4294967295, %s4282_s22   ;;  %s38_s24 = sadd.s32 1, %s4278_s21  ;;  %s4282_s22 = sphi %s4384_s22, %s29_s22   ;;  %s4278_s21 = sphi %s4382_s21, %s5428_s21   ;;  %s4274_s20 = sphi %s4380_s20, %s5427_s20   ;;  %s4270_s19 = sphi %s4378_s19, %s5426_s19   ;;  %s4266_s18 = sphi %s4376_s18, %s5425_s18  }
   0xc   : > { %p39_p0 = scmp.ge.s32.totalorder %s38_s24, 2  ;;  %s50_s25 = sadd.s32 1, %s4270_s19 }
   0xd   : > { %p57_p1 = scmp.ne.s32.totalorder %s4270_s19, %s4266_s18  ;;  %p58_p2 = scmp.eq.s32.totalorder %s4282_s22, 0 }
   0xe   : > { %s5430_s24 = smov (%p39_p0, %s38_s24), 0  ;;  %p3405_p4 = scmp.ge.s32.totalorder %s4282_s22, 1 }
   0xf   : > { %5411 = sst [smem:[#allocation17_spill]] %s5430_s24  ;;  %p4409_p3 = por %p58_p2, %p57_p1 }
  0x10   : > { %s46_s27 = ssub.s32 %s4278_s21, %s5430_s24  ;;  %p394_p5 = scmp.lt.s32.totalorder %s4282_s22, 3 }
  0x11   : > { %p48_p6 = scmp.eq.s32.totalorder %s46_s27, 0  ;;  %p4423_p8 = scmp.eq.s32.totalorder %s5404_s23, 0 }
  0x12   : > { %p4417_p7 = pnand %p3405_p4, %p394_p5  ;;  %s4284_s17 = smov [#allocation7]  }
  0x13   : > { %s4428_s30 = scalar_select %p48_p6, %s4270_s19, %s50_s25  }
  0x14   : > { %p3881_p9 = pneg %p4417_p7  ;;  %s428_s27 = sshll.u32 %s4284_s17, 4  ;;  %s429_s27 = int_to_ptr.vmem [resolvable:$true] %s428_s27 }
  0x15   : > { %5415 = sst [smem:[#allocation18_spill]] %s4428_s30  ;;  %s4111_s23 = scalar_lea.vmem %s429_s27, 512 }
  0x16   : > { %p4434_p10 = pnand %p4423_p8, %p3881_p9  ;;  %p4112_p12 = scmp.ne.s32.totalorder %s429_s27, %s4111_s23 }
  0x17   : > { %p4119_p1 = scmp.lt.s32.totalorder %s429_s27, %s429_s27  ;;  %p4120_p2 = scmp.lt.s32.totalorder %s4111_s23, %s4111_s23 }
  0x18   : > { %p4102_p11 = pneg %p4434_p10 }
  0x19   : > { %p4121_p4 = por %p4120_p2, %p4119_p1 }
  0x1a   : > { %p4114_p13 = pnand %p4112_p12, %p4102_p11 }
  0x1c   : > { %p4115_p0 = pneg %p4114_p13 }
  0x1e   : > { %p4122_p5 = pnand %p4121_p4, %p4115_p0 }
  0x20   : > { %4125 = shalt.err (!%p4122_p5)
}
  0x21   : > { %s4285_s25 = smov 64   ;;  %s4286_s24 = smov 4  }
  0x22   : > { %3887 = dma.hbm_to_vmem [thread:$0]  (!%p4434_p10), %s5393_s5, 512, %s429_s27, [#allocation8], %s4285_s25, %s4285_s25, %s4286_s24  }
  0x23   : > { %s4287_s15 = smov [#allocation4]   ;;  %s4288_s12 = smov [#allocation9]  }
  0x24   : > { %s412_s14 = sshll.u32 %s4287_s15, 4  ;;  %s444_s13 = sshll.u32 %s4288_s12, 4  ;;  %s413_s14 = int_to_ptr.vmem [resolvable:$true] %s412_s14  ;;  %s445_s13 = int_to_ptr.vmem [resolvable:$true] %s444_s13 }
  0x25   : > { %s4137_s23 = scalar_lea.vmem %s413_s14, 512  ;;  %p4145_p13 = scmp.lt.s32.totalorder %s413_s14, %s413_s14 }
  0x26   : > { %p4138_p6 = scmp.ne.s32.totalorder %s413_s14, %s4137_s23  ;;  %p4146_p0 = scmp.lt.s32.totalorder %s4137_s23, %s4137_s23 }
  0x28   : > { %p4140_p9 = pnand %p4138_p6, %p4102_p11  ;;  %p4147_p1 = por %p4146_p0, %p4145_p13 }
  0x2a   : > { %p4141_p12 = pneg %p4140_p9 }
  0x2c   : > { %p4148_p2 = pnand %p4147_p1, %p4141_p12 }
  0x2e   : > { %4151 = shalt.err (!%p4148_p2)
}
  0x2f   : > { %3884 = dma.hbm_to_vmem [thread:$0]  (!%p4434_p10), %s5391_s3, 512, %s413_s14, [#allocation5], %s4285_s25, %s4285_s25, %s4286_s24  }
  0x30   : > { %s4163_s30 = scalar_lea.vmem %s445_s13, 512  ;;  %p4171_p9 = scmp.lt.s32.totalorder %s445_s13, %s445_s13 }
  0x31   : > { %p4164_p4 = scmp.ne.s32.totalorder %s445_s13, %s4163_s30  ;;  %p4172_p13 = scmp.lt.s32.totalorder %s4163_s30, %s4163_s30 }
  0x33   : > { %p4166_p5 = pnand %p4164_p4, %p4102_p11  ;;  %p4173_p12 = por %p4172_p13, %p4171_p9 }
  0x35   : > { %p4167_p6 = pneg %p4166_p5 }
  0x37   : > { %p4174_p0 = pnand %p4173_p12, %p4167_p6 }
  0x39   : > { %4177 = shalt.err (!%p4174_p0)
}
  0x3a   : > { %3890 = dma.hbm_to_vmem [thread:$0]  (!%p4434_p10), %s5395_s7, 512, %s445_s13, [#allocation8], %s4285_s25, %s4285_s25, %s4286_s24  }
  0x3b   : > { %s4289_s14 = smov [#allocation10]  }
  0x3c   : > { %s460_s23 = sshll.u32 %s4289_s14, 4  ;;  %s461_s23 = int_to_ptr.vmem [resolvable:$true] %s460_s23 }
  0x3d   : > { %s4189_s15 = scalar_lea.vmem %s461_s23, 1024  ;;  %p4197_p5 = scmp.lt.s32.totalorder %s461_s23, %s461_s23 }
  0x3e   : > { %p4190_p1 = scmp.ne.s32.totalorder %s461_s23, %s4189_s15  ;;  %p4198_p6 = scmp.lt.s32.totalorder %s4189_s15, %s4189_s15 }
  0x40   : > { %p4192_p2 = pnand %p4190_p1, %p4102_p11  ;;  %p4199_p9 = por %p4198_p6, %p4197_p5 }
  0x42   : > { %p4193_p4 = pneg %p4192_p2 }
  0x44   : > { %p4200_p13 = pnand %p4199_p9, %p4193_p4 }
  0x46   : > { %4203 = shalt.err (!%p4200_p13)
}
  0x47   : > { %3893 = dma.hbm_to_vmem [thread:$0]  (!%p4434_p10), %s5397_s9, 1024, %s461_s23, [#allocation11], %s4285_s25, %s4285_s25, %s4286_s24  }
  0x48   : > { %p3410_p12 = scmp.ge.s32.totalorder %s4282_s22, 2 }
  0x4a   : > { %485 = sbr.rel (%p3410_p12) target bundleno = 99 (0x63), region = 72 }
  0x4f   : > { %488 = sbr.rel (!%p4409_p3) target bundleno = 99 (0x63), region = 76  ;;  %s490_s30 = sand.u32 (%p4409_p3), 1, %s4270_s19  }
  0x50   : > { %s3564_s27 = sshll.u32 (%p4409_p3), %s4278_s21, 7  ;;  %s3411_s17 = sshll.u32 (%p4409_p3), %s490_s30, 8 }
  0x51   : > { %s4492_s15 = scalar_lea.vmem (%p4409_p3), %s5388_s0, %s3564_s27  ;;  %s4497_s24 = scalar_lea.vmem (%p4409_p3), [#allocation3], %s3411_s17 }
  0x52   : > { %v589_v0 = vld [vmem:[%s4492_s15] sm:$0xff] (%p4409_p3)  ;;  %v591_v1 = vld [vmem:[%s4492_s15 + $0x8] sm:$0xff] (%p4409_p3)  ;;  %v593_v2 = vld [vmem:[%s4492_s15 + $0x10] sm:$0xff] (%p4409_p3) }
  0x53   : > { %590 = vst [vmem:[%s4497_s24] sm:$0xff] (%p4409_p3), %v589_v0  ;;  %592 = vst [vmem:[%s4497_s24 + $0x8] sm:$0xff] (%p4409_p3), %v591_v1  ;;  %v595_v3 = vld [vmem:[%s4492_s15 + $0x18] sm:$0xff] (%p4409_p3)  ;;  %v597_v4 = vld [vmem:[%s4492_s15 + $0x20] sm:$0xff] (%p4409_p3) }
  0x54   : > { %594 = vst [vmem:[%s4497_s24 + $0x10] sm:$0xff] %v593_v2  ;;  %v599_v5 = vld [vmem:[%s4492_s15 + $0x28] sm:$0xff]  ;;  %596 = vst [vmem:[%s4497_s24 + $0x18] sm:$0xff] %v595_v3  ;;  %v601_v6 = vld [vmem:[%s4492_s15 + $0x30] sm:$0xff] }
  0x55   : > { %598 = vst [vmem:[%s4497_s24 + $0x20] sm:$0xff] %v597_v4  ;;  %600 = vst [vmem:[%s4497_s24 + $0x28] sm:$0xff] %v599_v5  ;;  %v603_v7 = vld [vmem:[%s4492_s15 + $0x38] sm:$0xff]  ;;  %v605_v8 = vld [vmem:[%s4492_s15 + $0x40] sm:$0xff] }
  0x56   : > { %602 = vst [vmem:[%s4497_s24 + $0x30] sm:$0xff] %v601_v6  ;;  %604 = vst [vmem:[%s4497_s24 + $0x38] sm:$0xff] %v603_v7  ;;  %v607_v9 = vld [vmem:[%s4492_s15 + $0x48] sm:$0xff]  ;;  %v609_v10 = vld [vmem:[%s4492_s15 + $0x50] sm:$0xff] }
  0x57   : > { %606 = vst [vmem:[%s4497_s24 + $0x40] sm:$0xff] %v605_v8  ;;  %v611_v11 = vld [vmem:[%s4492_s15 + $0x58] sm:$0xff]  ;;  %608 = vst [vmem:[%s4497_s24 + $0x48] sm:$0xff] %v607_v9  ;;  %v613_v12 = vld [vmem:[%s4492_s15 + $0x60] sm:$0xff] }
  0x58   : > { %610 = vst [vmem:[%s4497_s24 + $0x50] sm:$0xff] %v609_v10  ;;  %612 = vst [vmem:[%s4497_s24 + $0x58] sm:$0xff] %v611_v11  ;;  %v615_v13 = vld [vmem:[%s4492_s15 + $0x68] sm:$0xff]  ;;  %v617_v14 = vld [vmem:[%s4492_s15 + $0x70] sm:$0xff] }
  0x59   : > { %614 = vst [vmem:[%s4497_s24 + $0x60] sm:$0xff] %v613_v12  ;;  %616 = vst [vmem:[%s4497_s24 + $0x68] sm:$0xff] %v615_v13  ;;  %v619_v15 = vld [vmem:[%s4492_s15 + $0x78] sm:$0xff]  ;;  %v621_v16 = vld [vmem:[%s4492_s15 + $0x100] sm:$0xff] }
  0x5a   : > { %618 = vst [vmem:[%s4497_s24 + $0x70] sm:$0xff] %v617_v14  ;;  %v623_v17 = vld [vmem:[%s4492_s15 + $0x108] sm:$0xff]  ;;  %620 = vst [vmem:[%s4497_s24 + $0x78] sm:$0xff] %v619_v15  ;;  %v625_v18 = vld [vmem:[%s4492_s15 + $0x110] sm:$0xff] }
  0x5b   : > { %622 = vst [vmem:[%s4497_s24 + $0x80] sm:$0xff] %v621_v16  ;;  %624 = vst [vmem:[%s4497_s24 + $0x88] sm:$0xff] %v623_v17  ;;  %v627_v19 = vld [vmem:[%s4492_s15 + $0x118] sm:$0xff]  ;;  %v629_v20 = vld [vmem:[%s4492_s15 + $0x120] sm:$0xff] }
  0x5c   : > { %626 = vst [vmem:[%s4497_s24 + $0x90] sm:$0xff] %v625_v18  ;;  %628 = vst [vmem:[%s4497_s24 + $0x98] sm:$0xff] %v627_v19  ;;  %v631_v21 = vld [vmem:[%s4492_s15 + $0x128] sm:$0xff]  ;;  %v633_v22 = vld [vmem:[%s4492_s15 + $0x130] sm:$0xff] }
  0x5d   : > { %630 = vst [vmem:[%s4497_s24 + $0xa0] sm:$0xff] %v629_v20  ;;  %v635_v23 = vld [vmem:[%s4492_s15 + $0x138] sm:$0xff]  ;;  %632 = vst [vmem:[%s4497_s24 + $0xa8] sm:$0xff] %v631_v21  ;;  %v637_v24 = vld [vmem:[%s4492_s15 + $0x140] sm:$0xff] }
  0x5e   : > { %634 = vst [vmem:[%s4497_s24 + $0xb0] sm:$0xff] %v633_v22  ;;  %636 = vst [vmem:[%s4497_s24 + $0xb8] sm:$0xff] %v635_v23  ;;  %v639_v25 = vld [vmem:[%s4492_s15 + $0x148] sm:$0xff]  ;;  %v641_v26 = vld [vmem:[%s4492_s15 + $0x150] sm:$0xff] }
  0x5f   : > { %638 = vst [vmem:[%s4497_s24 + $0xc0] sm:$0xff] %v637_v24  ;;  %640 = vst [vmem:[%s4497_s24 + $0xc8] sm:$0xff] %v639_v25  ;;  %v643_v27 = vld [vmem:[%s4492_s15 + $0x158] sm:$0xff]  ;;  %v645_v28 = vld [vmem:[%s4492_s15 + $0x160] sm:$0xff] }
  0x60   : > { %642 = vst [vmem:[%s4497_s24 + $0xd0] sm:$0xff] %v641_v26  ;;  %v647_v29 = vld [vmem:[%s4492_s15 + $0x168] sm:$0xff]  ;;  %644 = vst [vmem:[%s4497_s24 + $0xd8] sm:$0xff] %v643_v27  ;;  %v649_v30 = vld [vmem:[%s4492_s15 + $0x170] sm:$0xff] }
  0x61   : > { %646 = vst [vmem:[%s4497_s24 + $0xe0] sm:$0xff] %v645_v28  ;;  %648 = vst [vmem:[%s4497_s24 + $0xe8] sm:$0xff] %v647_v29  ;;  %v651_v31 = vld [vmem:[%s4492_s15 + $0x178] sm:$0xff] }
  0x62   : > { %650 = vst [vmem:[%s4497_s24 + $0xf0] sm:$0xff] %v649_v30  ;;  %652 = vst [vmem:[%s4497_s24 + $0xf8] sm:$0xff] %v651_v31 }
  0x63 PF: > { %661 = sbr.rel (%p4417_p7) target bundleno = 1826 (0x722), region = 114  ;;  %s664_s26 = sand.u32 (!%p4417_p7), 1, %s4266_s18  }
  0x64   : > { %s3415_s25 = sshll.u32 (!%p4417_p7), %s664_s26, 8 }
  0x65   : > { %s4563_s23 = scalar_lea.vmem (!%p4417_p7), [#allocation3], %s3415_s25 }
  0x68   : > { %4249 = dma.done.wait (%p4423_p8), [#allocation5], 512  }
  0x69   : > { %4251 = vsyncadd (%p4423_p8), [#allocation5], 4294966784 }
  0x6a   : > { %4253 = dma.done.wait (%p4423_p8), [#allocation8], 1024  }
  0x6b   : > { %4255 = vsyncadd (%p4423_p8), [#allocation8], 4294966272 }
  0x6c   : > { %4257 = dma.done.wait (%p4423_p8), [#allocation11], 1024  }
  0x6d   : > { %4259 = vsyncadd (%p4423_p8), [#allocation11], 4294966272  ;;  %p3420_p3 = scmp.ne.s32.totalorder %s4274_s20, 0 }
  0x6f   : > { %728 = sbr.rel (%p3420_p3) target bundleno = 118 (0x76), region = 138 }
  0x74   : > { %v4290_v32 = vmov -inf  }
  0x75   : > { %729 = vst [vmem:[#allocation2] sm:$0x3] %v4290_v32 }
  0x76 PF: > { %v4579_v33 = vld [vmem:[%s4563_s23 + $0x10] sm:$0xff]  ;;  %v730_v34 = vld [vmem:[%s4563_s23] sm:$0xff]  ;;  %v4291_v35 = vmov 1   ;;  %v735_v36 = vld [vmem:[%s4563_s23 + $0x28] sm:$0xff]  ;;  %v4292_v40 = vmov 0   ;;  %v4293_v41 = vmov 2   ;;  %v923_v25 = vlaneseq }
  0x77   : > { %3958 = vset.pattern.permute.xlu0 %v4291_v35  ;;  %3956 = vset.pattern.permute.xlu1 %v4291_v35  ;;  %v731_v37 = vld [vmem:[%s4563_s23 + $0x8] sm:$0xff]  ;;  %v736_v38 = vld [vmem:[%s4563_s23 + $0x30] sm:$0xff]  ;;  %v733_v39 = vld [vmem:[%s4563_s23 + $0x18] sm:$0xff]  ;;  %vm1477_vm0 = vcmask 523264   ;;  %vm2636_vm1 = vcmask 1041409   ;;  %p3494_p7 = scmp.ne.s32.totalorder %s4274_s20, 1 }
  0x78   : > { %968 = vperm.xlu0 %3958, %v4579_v33   ;;  %960 = vperm.xlu1 %3956, %v730_v34   ;;  %v734_v42 = vld [vmem:[%s4563_s23 + $0x20] sm:$0xff]  ;;  %v737_v43 = vld [vmem:[%s4563_s23 + $0x38] sm:$0xff]  ;;  %v739_v44 = vld [vmem:[%s4563_s23 + $0x48] sm:$0xff]  ;;  %v4724_v28 = vshrl.u32 %v923_v25, 7  ;;  %s5418_s12 = sld [smem:[#allocation19_spill]] (!%p3494_p7) }
  0x79   : > { %v4598_v45 = vld [vmem:[%s4563_s23 + $0x60] sm:$0xff]  ;;  %v4602_v46 = vld [vmem:[%s4563_s23 + $0x78] sm:$0xff]  ;;  %v4607_v47 = vld [vmem:[%s4563_s23 + $0x88] sm:$0xff]  ;;  %s5419_s27 = sld [smem:[#allocation21_spill]] (!%p3494_p7) }
  0x7a   : > { %v4612_v48 = vld [vmem:[%s4563_s23 + $0xa0] sm:$0xff]  ;;  %v4617_v49 = vld [vmem:[%s4563_s23 + $0xb8] sm:$0xff]  ;;  %v4621_v50 = vld [vmem:[%s4563_s23 + $0xc8] sm:$0xff]  ;;  %v1089_v31 = vsub.s32 1, %v4724_v28 }
  0x7b   : > { %v4000_v51 = vld [vmem:[#allocation4 + $0x18] sm:$0xff]   ;;  %v4001_v52 = vld [vmem:[#allocation4 + $0x10] sm:$0xff]   ;;  %v4002_v53 = vld [vmem:[#allocation4 + $0x8] sm:$0xff]  }
  0x7c   : > { %980 = vperm.xlu0 %3958, %v735_v36   ;;  %964 = vperm.xlu1 %3956, %v731_v37   ;;  %v738_v54 = vld [vmem:[%s4563_s23 + $0x40] sm:$0xff]  ;;  %v740_v56 = vld [vmem:[%s4563_s23 + $0x50] sm:$0xff]  ;;  %v741_v57 = vld [vmem:[%s4563_s23 + $0x58] sm:$0xff] }
  0x7d   : > { %3693 = vmatprep.subr.bf16.mxu0 %v4000_v51  ;;  %v4003_v55 = vld [vmem:[#allocation4] sm:$0xff]   ;;  %v4638_v58 = vld [vmem:[%s4563_s23 + $0x90] sm:$0xff]  ;;  %v743_v61 = vld [vmem:[%s4563_s23 + $0x68] sm:$0xff] }
  0x7e   : > { %3694 = vmatpush3.bf16.msra.mxu0 %v4000_v51  ;;  %v4645_v59 = vld [vmem:[%s4563_s23 + $0xd0] sm:$0xff]  ;;  %v4649_v60 = vld [vmem:[%s4563_s23 + $0xe0] sm:$0xff]  ;;  %v4663_v63 = vld [vmem:[%s4563_s23 + $0xa8] sm:$0xff] }
  0x7f   : > { %3695 = vmatprep.subr.bf16.mxu0 %v4001_v52  ;;  %v744_v62 = vld [vmem:[%s4563_s23 + $0x70] sm:$0xff]  ;;  %v746_v7 = vld [vmem:[%s4563_s23 + $0x80] sm:$0xff]  ;;  %v4685_v8 = vld [vmem:[%s4563_s23 + $0xe8] sm:$0xff] }
  0x80   : > { %984 = vperm.xlu0 %3958, %v736_v38   ;;  %3957 = vset.pattern.permute.xlu1 %v4292_v40  ;;  %v4672_v2 = vld [vmem:[%s4563_s23 + $0xb0] sm:$0xff]  ;;  %v749_v16 = vld [vmem:[%s4563_s23 + $0x98] sm:$0xff] }
  0x81   : > { %780 = vperm.xlu1 %3957, %v733_v39   ;;  %v4690_v10 = vld [vmem:[%s4563_s23 + $0xf0] sm:$0xff]  ;;  %v4705_v17 = vld [vmem:[%s4563_s23 + $0xf8] sm:$0xff] }
  0x82   : > { %3696 = vmatpush3.bf16.msra.mxu0 %v4001_v52  ;;  %v762_v32 = vld [vmem:[%s5389_s1] sm:$0x7] }
  0x83   : > { %3697 = vmatprep.subr.bf16.mxu0 %v4002_v53 }
  0x84   : > { %3964 = vset.pattern.permute.xlu0 %v4293_v41 }
  0x85   : > { %1160 = vperm.xlu0 %3964, %v731_v37   ;;  %3959 = vset.pattern.permute.xlu1 %v4291_v35 }
  0x86   : > { %972 = vperm.xlu1 %3959, %v733_v39   ;;  %3698 = vmatpush3.bf16.msra.mxu0 %v4002_v53 }
  0x87   : > { %3699 = vmatprep.subr.bf16.mxu0 %v4003_v55 }
  0x89   : > { %1172 = vperm.xlu0 %3964, %v734_v42  }
  0x8a   : > { %3960 = vset.pattern.permute.xlu1 %v4293_v41  ;;  %3700 = vmatpush3.bf16.msra.mxu0 %v4003_v55 }
  0x8b   : > { %1156 = vperm.xlu1 %3960, %v730_v34  }
  0x8d   : > { %1184 = vperm.xlu0 %3964, %v737_v43  }
  0x8f   : > { %1164 = vperm.xlu1 %3960, %v4579_v33  }
  0x91   : > { %1192 = vperm.xlu0 %3964, %v739_v44  }
  0x93   : > { %1168 = vperm.xlu1 %3960, %v733_v39  }
  0x95   : > { %1204 = vperm.xlu0 %3964, %v4598_v45  }
  0x97   : > { %3961 = vset.pattern.permute.xlu1 %v4292_v40 }
  0x98   : > { %790 = vperm.xlu1 %3961, %v735_v36  }
  0x99   : > { %1216 = vperm.xlu0 %3964, %v4602_v46  }
  0x9c   : > { %3962 = vset.pattern.permute.xlu1 %v4291_v35 }
  0x9d   : > { %1224 = vperm.xlu0 %3964, %v4607_v47   ;;  %976 = vperm.xlu1 %3962, %v734_v42  }
  0xa1   : > { %1236 = vperm.xlu0 %3964, %v4612_v48   ;;  %3963 = vset.pattern.permute.xlu1 %v4292_v40 }
  0xa2   : > { %795 = vperm.xlu1 %3963, %v736_v38  }
  0xa5   : > { %1248 = vperm.xlu0 %3964, %v4617_v49  }
  0xa6   : > { %800 = vperm.xlu1 %3963, %v737_v43  }
  0xa9   : > { %1256 = vperm.xlu0 %3964, %v4621_v50  }
  0xaa   : > { %3965 = vset.pattern.permute.xlu1 %v4291_v35 }
  0xab   : > { %988 = vperm.xlu1 %3965, %v737_v43  }
  0xad   : > { %3992 = vset.pattern.permute.xlu0 %v4292_v40 }
  0xae   : > { %765 = vperm.xlu0 %3992, %v730_v34   ;;  %v1285_v34 = vsub.s32 2, %v4724_v28 }
  0xaf   : > { %3966 = vset.pattern.permute.xlu1 %v4293_v41 }
  0xb0   : > { %1176 = vperm.xlu1 %3966, %v735_v36  }
  0xb2   : > { %770 = vperm.xlu0 %3992, %v731_v37   ;;  %v4740_v37 = vrot.slane %v762_v32, %v1089_v31 }
  0xb4   : > { %1180 = vperm.xlu1 %3966, %v736_v38  }
  0xb6   : > { %775 = vperm.xlu0 %3992, %v4579_v33   ;;  %v925_v33 = vsub.s32 0, %v4724_v28 }
  0xb8   : > { %3967 = vset.pattern.permute.xlu1 %v4292_v40  ;;  %v4744_v39 = vrot.slane %v762_v32, %v925_v33 }
  0xb9   : > { %805 = vperm.xlu1 %3967, %v738_v54  }
  0xba   : > { %785 = vperm.xlu0 %3992, %v734_v42   ;;  %v4748_v42 = vrot.slane %v762_v32, %v1285_v34 }
  0xbd   : > { %3968 = vset.pattern.permute.xlu1 %v4291_v35 }
  0xbe   : > { %810 = vperm.xlu0 %3992, %v739_v44   ;;  %992 = vperm.xlu1 %3968, %v738_v54  }
  0xc2   : > { %815 = vperm.xlu0 %3992, %v740_v56   ;;  %996 = vperm.xlu1 %3968, %v739_v44  }
  0xc6   : > { %825 = vperm.xlu0 %3992, %v4598_v45   ;;  %3969 = vset.pattern.permute.xlu1 %v4292_v40 }
  0xc7   : > { %820 = vperm.xlu1 %3969, %v741_v57  }
  0xca   : > { %850 = vperm.xlu0 %3992, %v4607_v47  }
  0xcb   : > { %3970 = vset.pattern.permute.xlu1 %v4291_v35 }
  0xcc   : > { %1004 = vperm.xlu1 %3970, %v741_v57  }
  0xce   : > { %855 = vperm.xlu0 %3992, %v4638_v58  }
  0xd0   : > { %3971 = vset.pattern.permute.xlu1 %v4293_v41 }
  0xd1   : > { %1188 = vperm.xlu1 %3971, %v738_v54  }
  0xd2   : > { %865 = vperm.xlu0 %3992, %v4612_v48  }
  0xd5   : > { %1196 = vperm.xlu1 %3971, %v740_v56  }
  0xd6   : > { %890 = vperm.xlu0 %3992, %v4621_v50  }
  0xd9   : > { %1200 = vperm.xlu1 %3971, %v741_v57  }
  0xda   : > { %895 = vperm.xlu0 %3992, %v4645_v59  }
  0xdd   : > { %3972 = vset.pattern.permute.xlu1 %v4292_v40 }
  0xde   : > { %905 = vperm.xlu0 %3992, %v4649_v60   ;;  %830 = vperm.xlu1 %3972, %v743_v61  }
  0xe2   : > { %3993 = vset.pattern.permute.xlu0 %v4291_v35  ;;  %3973 = vset.pattern.permute.xlu1 %v4291_v35 }
  0xe3   : > { %1000 = vperm.xlu0 %3993, %v740_v56   ;;  %1008 = vperm.xlu1 %3973, %v4598_v45  }
  0xe7   : > { %1012 = vperm.xlu0 %3993, %v743_v61   ;;  %3974 = vset.pattern.permute.xlu1 %v4292_v40 }
  0xe8   : > { %835 = vperm.xlu1 %3974, %v744_v62  }
  0xeb   : > { %1016 = vperm.xlu0 %3993, %v744_v62  }
  0xec   : > { %840 = vperm.xlu1 %3974, %v4602_v46  }
  0xef   : > { %1032 = vperm.xlu0 %3993, %v4638_v58  }
  0xf0   : > { %3975 = vset.pattern.permute.xlu1 %v4291_v35 }
  0xf1   : > { %1020 = vperm.xlu1 %3975, %v4602_v46  }
  0xf3   : > { %v4666_v0 = vpop.permute.xlu1 %960  ;;  %v4668_v1 = vpop.permute.xlu0 %968  ;;  %1044 = vperm.xlu0 %3993, %v4663_v63  }
  0xf4   : > { %v1091_v44 = vmul.f32 %v4740_v37, %v4666_v0 }
  0xf5   : > { %3976 = vset.pattern.permute.xlu1 %v4293_v41 }
  0xf6   : > { %1208 = vperm.xlu1 %3976, %v743_v61  }
  0xf7   : > { %v4675_v3 = vpop.permute.xlu1 %964  ;;  %v4677_v4 = vpop.permute.xlu0 %980  ;;  %1048 = vperm.xlu0 %3993, %v4672_v2  }
  0xf8   : > { %v1092_v55 = vmul.f32 %v4740_v37, %v4675_v3  ;;  %v1093_v3 = vmul.f32 %v4740_v37, %v4668_v1 }
  0xfa   : > { %1212 = vperm.xlu1 %3976, %v744_v62   ;;  %v1096_v62 = vmul.f32 %v4740_v37, %v4677_v4 }
  0xfb   : > { %v4680_v5 = vpop.permute.xlu0 %984  ;;  %1064 = vperm.xlu0 %3993, %v4645_v59  }
  0xfc   : > { %v781_v6 = vpop.permute.xlu1 %780 }
  0xfd   : > { %v930_v51 = vmul.f32 %v4744_v39, %v781_v6 }
  0xfe   : > { %3977 = vset.pattern.permute.xlu1 %v4292_v40 }
  0xff   : > { %845 = vperm.xlu1 %3977, %v746_v7   ;;  %1076 = vperm.xlu0 %3993, %v4685_v8  }
 0x100   : > { %v1161_v9 = vpop.permute.xlu0 %1160 }
 0x101   : > { %v973_v11 = vpop.permute.xlu1 %972 }
 0x102   : > { %v1094_v45 = vmul.f32 %v4740_v37, %v973_v11 }
 0x103   : > { %3978 = vset.pattern.permute.xlu1 %v4291_v35  ;;  %1080 = vperm.xlu0 %3993, %v4690_v10  }
 0x104   : > { %1024 = vperm.xlu1 %3978, %v746_v7   ;;  %v4694_v12 = vpop.permute.xlu0 %1172  ;;  %v1126_v57 = vadd.f32 %v1094_v45, %v930_v51 }
 0x105   : > { %v1291_v1 = vmul.f32 %v4748_v42, %v4694_v12 }
 0x106   : > { %v1157_v13 = vpop.permute.xlu1 %1156 }
 0x107   : > { %3998 = vset.pattern.permute.xlu0 %v4293_v41  ;;  %v1287_v52 = vmul.f32 %v4748_v42, %v1157_v13  ;;  %v4775_v13 = vld [vmem:[%s5390_s2] ss:$0 sm:$0xff] }
 0x108   : > { %1028 = vperm.xlu1 %3978, %v4607_v47   ;;  %v4698_v14 = vpop.permute.xlu0 %1184  ;;  %1268 = vperm.xlu0 %3998, %v4649_v60  }
 0x10a   : > { %v4701_v15 = vpop.permute.xlu1 %1164 }
 0x10c   : > { %3979 = vset.pattern.permute.xlu1 %v4292_v40  ;;  %v4708_v18 = vpop.permute.xlu0 %1192  ;;  %1280 = vperm.xlu0 %3998, %v4705_v17  }
 0x10d   : > { %860 = vperm.xlu1 %3979, %v749_v16  }
 0x10e   : > { %v1169_v19 = vpop.permute.xlu1 %1168 }
 0x10f   : > { %v1290_v53 = vmul.f32 %v4748_v42, %v1169_v19 }
 0x110   : > { %v4711_v20 = vpop.permute.xlu0 %1204 }
 0x111   : > { %3980 = vset.pattern.permute.xlu1 %v4291_v35 }
 0x112   : > { %1036 = vperm.xlu1 %3980, %v749_v16  }
 0x113   : > { %v791_v21 = vpop.permute.xlu1 %790 }
 0x114   : > { %v4714_v22 = vpop.permute.xlu0 %1216  ;;  %v932_v0 = vmul.f32 %v4744_v39, %v791_v21 }
 0x116   : > { %3981 = vset.pattern.permute.xlu1 %v4293_v41 }
 0x117   : > { %1220 = vperm.xlu1 %3981, %v746_v7   ;;  %v1322_v7 = vadd.f32 %v1290_v53, %v1126_v57 }
 0x118   : > { %v4717_v23 = vpop.permute.xlu1 %976  ;;  %v4719_v24 = vpop.permute.xlu0 %1224 }
 0x119   : > { %v1361_v45 = vadd.f32 %v4775_v13, %v1322_v7 }
 0x11b   : > { %1228 = vperm.xlu1 %3981, %v4638_v58  }
 0x11c   : > { %v4722_v26 = vpop.permute.xlu0 %1236 }
 0x11d   : > { %v796_v27 = vpop.permute.xlu1 %795 }
 0x11f   : > { %1232 = vperm.xlu1 %3981, %v749_v16   ;;  %v933_v16 = vmul.f32 %v4744_v39, %v796_v27  ;;  %v1289_v27 = vmul.f32 %v4748_v42, %v4701_v15 }
 0x120   : > { %v4726_v29 = vpop.permute.xlu0 %1248 }
 0x121   : > { %v801_v30 = vpop.permute.xlu1 %800 }
 0x123   : > { %3982 = vset.pattern.permute.xlu1 %v4292_v40 }
 0x124   : > { %870 = vperm.xlu1 %3982, %v4663_v63   ;;  %v4736_v36 = vpop.permute.xlu0 %1256 }
 0x126   : > { %v989_v38 = vpop.permute.xlu1 %988 }
 0x127   : > { %v1098_v4 = vmul.f32 %v4740_v37, %v989_v38  ;;  %v1128_v38 = vadd.f32 %v1096_v62, %v932_v0 }
 0x128   : > { %3983 = vset.pattern.permute.xlu1 %v4291_v35 }
 0x129   : > { %v766_v43 = vpop.permute.xlu0 %765  ;;  %1040 = vperm.xlu1 %3983, %v4612_v48   ;;  %v1288_v48 = vmul.f32 %v4748_v42, %v1161_v9  ;;  %v1097_v9 = vmul.f32 %v4740_v37, %v4680_v5 }
 0x12a   : > { %v927_v46 = vmul.f32 %v4744_v39, %v766_v43  ;;  %v1294_v43 = vmul.f32 %v4748_v42, %v4698_v14 }
 0x12b   : > { %v1177_v47 = vpop.permute.xlu1 %1176  ;;  %v1129_v53 = vadd.f32 %v1097_v9, %v933_v16 }
 0x12c   : > { %v1123_v54 = vadd.f32 %v1091_v44, %v927_v46  ;;  %v1292_v19 = vmul.f32 %v4748_v42, %v1177_v47  ;;  %v934_v44 = vmul.f32 %v4744_v39, %v801_v30 }
 0x12d   : > { %v771_v56 = vpop.permute.xlu0 %770  ;;  %3984 = vset.pattern.permute.xlu1 %v4292_v40 }
 0x12e   : > { %v1319_v58 = vadd.f32 %v1287_v52, %v1123_v54  ;;  %v928_v61 = vmul.f32 %v4744_v39, %v771_v56  ;;  %875 = vperm.xlu1 %3984, %v4672_v2   ;;  %v1095_v52 = vmul.f32 %v4740_v37, %v4717_v23  ;;  %v1130_v54 = vadd.f32 %v1098_v4, %v934_v44 }
 0x12f   : > { %v1181_v6 = vpop.permute.xlu1 %1180  ;;  %v1324_v14 = vadd.f32 %v1292_v19, %v1128_v38  ;;  %v1393_v23 = vmax.f32 %v1361_v45, 0.0 }
 0x130   : > { %v1124_v11 = vadd.f32 %v1092_v55, %v928_v61  ;;  %v1358_v5 = vadd.f32 %v4775_v13, %v1319_v58  ;;  %v1293_v12 = vmul.f32 %v4748_v42, %v1181_v6 }
 0x131   : > { %v776_v21 = vpop.permute.xlu0 %775  ;;  %v1363_v7 = vadd.f32 %v4775_v13, %v1324_v14 }
 0x132   : > { %v1320_v25 = vadd.f32 %v1288_v48, %v1124_v11  ;;  %v929_v32 = vmul.f32 %v4744_v39, %v776_v21  ;;  %880 = vperm.xlu1 %3984, %v4617_v49   ;;  %v1390_v30 = vmax.f32 %v1358_v5, 0.0  ;;  %v1325_v57 = vadd.f32 %v1293_v12, %v1129_v53 }
 0x134   : > { %v1125_v46 = vadd.f32 %v1093_v3, %v929_v32  ;;  %v806_v47 = vpop.permute.xlu1 %805  ;;  %v1359_v51 = vadd.f32 %v4775_v13, %v1320_v25  ;;  %v1326_v3 = vadd.f32 %v1294_v43, %v1130_v54  ;;  %v1395_v32 = vmax.f32 %v1363_v7, 0.0 }
 0x135   : > { %v786_v55 = vpop.permute.xlu0 %785 }
 0x136   : > { %v1321_v56 = vadd.f32 %v1289_v27, %v1125_v46  ;;  %v931_v15 = vmul.f32 %v4744_v39, %v786_v55  ;;  %3985 = vset.pattern.permute.xlu1 %v4291_v35  ;;  %v1391_v48 = vmax.f32 %v1359_v51, 0.0  ;;  %v1365_v25 = vadd.f32 %v4775_v13, %v1326_v3 }
 0x137   : > { %1052 = vperm.xlu1 %3985, %v4617_v49   ;;  %v1364_v49 = vadd.f32 %v4775_v13, %v1325_v57  ;;  %v935_v55 = vmul.f32 %v4744_v39, %v806_v47 }
 0x138   : > { %v1360_v58 = vadd.f32 %v4775_v13, %v1321_v56  ;;  %v1127_v61 = vadd.f32 %v1095_v52, %v931_v15  ;;  %v1422_v62 = vpack.c.bf16 %v1391_v48, %v1390_v30  ;;  %v1397_v38 = vmax.f32 %v1365_v25, 0.0 }
 0x139   : > { %v993_v0 = vpop.permute.xlu1 %992  ;;  %v811_v6 = vpop.permute.xlu0 %810 }
 0x13a   : > { %v1392_v11 = vmax.f32 %v1360_v58, 0.0  ;;  %v1323_v9 = vadd.f32 %v1291_v1, %v1127_v61  ;;  %3701 = vmatprep.mubr.msk.bf16.mxu0 %vm1477_vm0, %v1422_v62  ;;  %v1396_v1 = vmax.f32 %v1364_v49, 0.0  ;;  %v936_v45 = vmul.f32 %v4744_v39, %v811_v6  ;;  %v757_v62 = vld [vmem:[%s4563_s23 + $0xd8] sm:$0xff] }
 0x13b   : > { %3986 = vset.pattern.permute.xlu1 %v4293_v41  ;;  %v1099_v54 = vmul.f32 %v4740_v37, %v993_v0 }
 0x13c   : > { %v1362_v16 = vadd.f32 %v4775_v13, %v1323_v9  ;;  %1240 = vperm.xlu1 %3986, %v4663_v63   ;;  %v1423_v4 = vpack.c.bf16 %v1393_v23, %v1392_v11  ;;  %v754_v63 = vld [vmem:[%s4563_s23 + $0xc0] sm:$0xff]  ;;  %v1425_v46 = vpack.c.bf16 %v1397_v38, %v1396_v1  ;;  %s5417_s23 = sld [smem:[#allocation20_spill]] (!%p3494_p7) }
 0x13d   : > { %v997_v19 = vpop.permute.xlu1 %996  ;;  %v816_v21 = vpop.permute.xlu0 %815  ;;  %v1131_v30 = vadd.f32 %v1099_v54, %v935_v55 }
 0x13e   : > { %v1394_v5 = vmax.f32 %v1362_v16, 0.0  ;;  %3702 = vmatmul.mubr.msk.bf16.vlgmr.msra.gmra.mxu0 %vm1477_vm0, %v1423_v4  ;;  %v1100_v12 = vmul.f32 %v4740_v37, %v997_v19  ;;  %v937_v19 = vmul.f32 %v4744_v39, %v816_v21 }
 0x140   : > { %1244 = vperm.xlu1 %3986, %v4672_v2   ;;  %v1424_v43 = vpack.c.bf16 %v1395_v32, %v1394_v5  ;;  %v1296_v2 = vmul.f32 %v4748_v42, %v4708_v18  ;;  %v1132_v52 = vadd.f32 %v1100_v12, %v936_v45 }
 0x141   : > { %v4808_v27 = vpop.permute.xlu0 %825 }
 0x142   : > { %3705 = vmatprep.mubr.msk.bf16.mxu0 %vm1477_vm0, %v1424_v43  ;;  %v821_v44 = vpop.permute.xlu1 %820  ;;  %v1328_v56 = vadd.f32 %v1296_v2, %v1132_v52 }
 0x143   : > { %v938_v16 = vmul.f32 %v4744_v39, %v821_v44 }
 0x144   : > { %3987 = vset.pattern.permute.xlu1 %v4292_v40  ;;  %v1367_v18 = vadd.f32 %v4775_v13, %v1328_v56 }
 0x145   : > { %885 = vperm.xlu1 %3987, %v754_v63   ;;  %v4815_v51 = vpop.permute.xlu0 %850 }
 0x146   : > { %3706 = vmatmul.mubr.msk.bf16.gmra.mxu0 %vm1477_vm0, %v1425_v46  ;;  %v1399_v47 = vmax.f32 %v1367_v18, 0.0 }
 0x147   : > { %v1005_v53 = vpop.permute.xlu1 %1004 }
 0x149   : > { %3988 = vset.pattern.permute.xlu1 %v4291_v35  ;;  %v4822_v14 = vpop.permute.xlu0 %855 }
 0x14a   : > { %1056 = vperm.xlu1 %3988, %v754_v63  }
 0x14c   : > { %v1189_v15 = vpop.permute.xlu1 %1188 }
 0x14d   : > { %v1295_v48 = vmul.f32 %v4748_v42, %v1189_v15  ;;  %v4826_v57 = vpop.permute.xlu0 %865 }
 0x14e   : > { %1060 = vperm.xlu1 %3988, %v4621_v50   ;;  %v1102_v50 = vmul.f32 %v4740_v37, %v1005_v53  ;;  %v939_v53 = vmul.f32 %v4744_v39, %v4808_v27 }
 0x14f   : > { %v1327_v58 = vadd.f32 %v1295_v48, %v1131_v30 }
 0x150   : > { %v1197_v61 = vpop.permute.xlu1 %1196  ;;  %v1134_v25 = vadd.f32 %v1102_v50, %v938_v16 }
 0x151   : > { %v1366_v23 = vadd.f32 %v4775_v13, %v1327_v58  ;;  %v4832_v0 = vpop.permute.xlu0 %890  ;;  %v1297_v38 = vmul.f32 %v4748_v42, %v1197_v61  ;;  %v1302_v61 = vmul.f32 %v4748_v42, %v4714_v22 }
 0x152   : > { %3989 = vset.pattern.permute.xlu1 %v4292_v40 }
 0x153   : > { %v1398_v6 = vmax.f32 %v1366_v23, 0.0  ;;  %900 = vperm.xlu1 %3989, %v757_v62  }
 0x154   : > { %v1201_v3 = vpop.permute.xlu1 %1200 }
 0x155   : > { %v1426_v7 = vpack.c.bf16 %v1399_v47, %v1398_v6  ;;  %v4835_v11 = vpop.permute.xlu0 %895  ;;  %v1298_v4 = vmul.f32 %v4748_v42, %v1201_v3 }
 0x157   : > { %3990 = vset.pattern.permute.xlu1 %v4291_v35  ;;  %3709 = vmatprep.mubr.msk.bf16.mxu0 %vm1477_vm0, %v1426_v7  ;;  %v1330_v1 = vadd.f32 %v1298_v4, %v1134_v25 }
 0x158   : > { %1068 = vperm.xlu1 %3990, %v757_v62  }
 0x159   : > { %v831_v9 = vpop.permute.xlu1 %830  ;;  %v4840_v49 = vpop.permute.xlu0 %905  ;;  %v1369_v44 = vadd.f32 %v4775_v13, %v1330_v1 }
 0x15b   : > { %v1401_v21 = vmax.f32 %v1369_v44, 0.0  ;;  %v4004_v44 = vld [vmem:[#allocation7 + $0x18] sm:$0xff]  }
 0x15c   : > { %3991 = vset.pattern.permute.xlu1 %v4293_v41  ;;  %3733 = vmatprep.subr.bf16.mxu1 %v4004_v44 }
 0x15d   : > { %1252 = vperm.xlu1 %3991, %v754_v63   ;;  %3734 = vmatpush3.bf16.msra.mxu1 %v4004_v44  ;;  %v1307_v44 = vmul.f32 %v4748_v42, %v4722_v26 }
 0x15e   : > { %v1001_v32 = vpop.permute.xlu0 %1000  ;;  %v1009_v5 = vpop.permute.xlu1 %1008 }
 0x15f   : > { %v1101_v43 = vmul.f32 %v4740_v37, %v1001_v32  ;;  %v1103_v54 = vmul.f32 %v4740_v37, %v1009_v5 }
 0x161   : > { %v1133_v45 = vadd.f32 %v1101_v43, %v937_v19  ;;  %1260 = vperm.xlu1 %3991, %v4645_v59   ;;  %v1299_v59 = vmul.f32 %v4748_v42, %v4711_v20  ;;  %v1135_v15 = vadd.f32 %v1103_v54, %v939_v53  ;;  %v4006_v53 = vld [vmem:[#allocation7 + $0x8] sm:$0xff]   ;;  %v1304_v54 = vmul.f32 %v4748_v42, %v4719_v24 }
 0x162   : > { %v1013_v55 = vpop.permute.xlu0 %1012 }
 0x163   : > { %v1329_v12 = vadd.f32 %v1297_v38, %v1133_v45  ;;  %v836_v46 = vpop.permute.xlu1 %835  ;;  %v1104_v18 = vmul.f32 %v4740_v37, %v1013_v55  ;;  %v1331_v23 = vadd.f32 %v1299_v59, %v1135_v15 }
 0x164   : > { %v941_v16 = vmul.f32 %v4744_v39, %v836_v46 }
 0x165   : > { %v1368_v2 = vadd.f32 %v4775_v13, %v1329_v12  ;;  %1264 = vperm.xlu1 %3991, %v757_v62   ;;  %v940_v62 = vmul.f32 %v4744_v39, %v831_v9  ;;  %v1370_v50 = vadd.f32 %v4775_v13, %v1331_v23 }
 0x166   : > { %v1017_v58 = vpop.permute.xlu0 %1016 }
 0x167   : > { %v1400_v52 = vmax.f32 %v1368_v2, 0.0  ;;  %v841_v63 = vpop.permute.xlu1 %840  ;;  %v1136_v6 = vadd.f32 %v1104_v18, %v940_v62  ;;  %v1105_v3 = vmul.f32 %v4740_v37, %v1017_v58  ;;  %v1402_v32 = vmax.f32 %v1370_v50, 0.0 }
 0x168   : > { %v942_v27 = vmul.f32 %v4744_v39, %v841_v63  ;;  %v944_v63 = vmul.f32 %v4744_v39, %v4815_v51 }
 0x169   : > { %3994 = vset.pattern.permute.xlu1 %v4292_v40  ;;  %v1427_v56 = vpack.c.bf16 %v1401_v21, %v1400_v52  ;;  %v1137_v9 = vadd.f32 %v1105_v3, %v941_v16  ;;  %v4005_v52 = vld [vmem:[#allocation7 + $0x10] sm:$0xff]  }
 0x16a   : > { %910 = vperm.xlu1 %3994, %v4685_v8   ;;  %3735 = vmatprep.subr.bf16.mxu1 %v4005_v52 }
 0x16b   : > { %3710 = vmatmul.mubr.msk.bf16.gmra.mxu0 %vm1477_vm0, %v1427_v56  ;;  %3736 = vmatpush3.bf16.msra.mxu1 %v4005_v52 }
 0x16c   : > { %v1021_v30 = vpop.permute.xlu1 %1020  ;;  %3737 = vmatprep.subr.bf16.mxu1 %v4006_v53 }
 0x16d   : > { %v1106_v48 = vmul.f32 %v4740_v37, %v1021_v30  ;;  %v945_v30 = vmul.f32 %v4744_v39, %v4822_v14 }
 0x16e   : > { %3995 = vset.pattern.permute.xlu1 %v4291_v35 }
 0x16f   : > { %1072 = vperm.xlu1 %3995, %v4649_v60   ;;  %v1138_v20 = vadd.f32 %v1106_v48, %v942_v27  ;;  %3738 = vmatpush3.bf16.msra.mxu1 %v4006_v53 }
 0x171   : > { %v1209_v47 = vpop.permute.xlu1 %1208  ;;  %v1334_v60 = vadd.f32 %v1302_v61, %v1138_v20 }
 0x172   : > { %v1300_v7 = vmul.f32 %v4748_v42, %v1209_v47 }
 0x173   : > { %3996 = vset.pattern.permute.xlu1 %v4292_v40  ;;  %v1373_v5 = vadd.f32 %v4775_v13, %v1334_v60 }
 0x174   : > { %v1332_v4 = vadd.f32 %v1300_v7, %v1136_v6  ;;  %915 = vperm.xlu1 %3996, %v4690_v10  }
 0x175   : > { %v1213_v22 = vpop.permute.xlu1 %1212  ;;  %v1405_v12 = vmax.f32 %v1373_v5, 0.0 }
 0x176   : > { %v1371_v19 = vadd.f32 %v4775_v13, %v1332_v4  ;;  %v1301_v25 = vmul.f32 %v4748_v42, %v1213_v22 }
 0x178   : > { %v1403_v1 = vmax.f32 %v1371_v19, 0.0  ;;  %v1333_v43 = vadd.f32 %v1301_v25, %v1137_v9  ;;  %920 = vperm.xlu1 %3996, %v4705_v17  }
 0x17a   : > { %v1428_v40 = vpack.c.bf16 %v1403_v1, %v1402_v32  ;;  %v1372_v38 = vadd.f32 %v4775_v13, %v1333_v43  ;;  %v846_v45 = vpop.permute.xlu1 %845 }
 0x17b   : > { %v943_v48 = vmul.f32 %v4744_v39, %v846_v45 }
 0x17c   : > { %v1404_v46 = vmax.f32 %v1372_v38, 0.0  ;;  %3997 = vset.pattern.permute.xlu1 %v4291_v35  ;;  %3713 = vmatprep.mubr.msk.bf16.mxu0 %vm1477_vm0, %v1428_v40  ;;  %v947_v38 = vmul.f32 %v4744_v39, %v4826_v57 }
 0x17d   : > { %1084 = vperm.xlu1 %3997, %v4705_v17  }
 0x17e   : > { %v1429_v2 = vpack.c.bf16 %v1405_v12, %v1404_v46 }
 0x17f   : > { %v1025_v21 = vpop.permute.xlu1 %1024 }
 0x180   : > { %3714 = vmatmul.mubr.msk.bf16.gmra.mxu0 %vm1477_vm0, %v1429_v2  ;;  %v1107_v15 = vmul.f32 %v4740_v37, %v1025_v21 }
 0x181   : > { %3999 = vset.pattern.permute.xlu1 %v4293_v41  ;;  %v4007_v41 = vld [vmem:[#allocation7] sm:$0xff]  }
 0x182   : > { %1272 = vperm.xlu1 %3999, %v4685_v8   ;;  %3739 = vmatprep.subr.bf16.mxu1 %v4007_v41  ;;  %v1033_v8 = vpop.permute.xlu0 %1032  ;;  %v1139_v27 = vadd.f32 %v1107_v15, %v943_v48 }
 0x183   : > { %v1029_v35 = vpop.permute.xlu1 %1028  ;;  %3740 = vmatpush3.bf16.msra.mxu1 %v4007_v41  ;;  %v1109_v24 = vmul.f32 %v4740_v37, %v1033_v8 }
 0x184   : > { %v1108_v17 = vmul.f32 %v4740_v37, %v1029_v35 }
 0x185   : > { %v1141_v62 = vadd.f32 %v1109_v24, %v945_v30 }
 0x186   : > { %v1140_v55 = vadd.f32 %v1108_v17, %v944_v63  ;;  %1276 = vperm.xlu1 %3999, %v4690_v10   ;;  %v1045_v52 = vpop.permute.xlu0 %1044 }
 0x187   : > { %v1112_v53 = vmul.f32 %v4740_v37, %v1045_v52 }
 0x188   : > { %v1336_v56 = vadd.f32 %v1304_v54, %v1140_v55  ;;  %v861_v59 = vpop.permute.xlu1 %860  ;;  %v1310_v55 = vmul.f32 %v4748_v42, %v4726_v29 }
 0x189   : > { %v946_v3 = vmul.f32 %v4744_v39, %v861_v59 }
 0x18a   : > { %v1375_v58 = vadd.f32 %v4775_v13, %v1336_v56  ;;  %v1049_v41 = vpop.permute.xlu0 %1048 }
 0x18b   : > { %v1113_v56 = vmul.f32 %v4740_v37, %v1049_v41 }
 0x18c   : > { %v1407_v14 = vmax.f32 %v1375_v58, 0.0 }
 0x18d   : > { %v1037_v51 = vpop.permute.xlu1 %1036 }
 0x18e   : > { %v1110_v20 = vmul.f32 %v4740_v37, %v1037_v51 }
 0x190   : > { %v1142_v60 = vadd.f32 %v1110_v20, %v946_v3 }
 0x192   : > { %v1221_v18 = vpop.permute.xlu1 %1220 }
 0x193   : > { %v1303_v10 = vmul.f32 %v4748_v42, %v1221_v18 }
 0x195   : > { %v1335_v61 = vadd.f32 %v1303_v10, %v1139_v27 }
 0x196   : > { %v1229_v23 = vpop.permute.xlu1 %1228 }
 0x197   : > { %v1374_v47 = vadd.f32 %v4775_v13, %v1335_v61  ;;  %v1305_v6 = vmul.f32 %v4748_v42, %v1229_v23 }
 0x199   : > { %v1406_v7 = vmax.f32 %v1374_v47, 0.0  ;;  %v1337_v50 = vadd.f32 %v1305_v6, %v1141_v62 }
 0x19a   : > { %v1233_v16 = vpop.permute.xlu1 %1232 }
 0x19b   : > { %v1430_v4 = vpack.c.bf16 %v1407_v14, %v1406_v7  ;;  %v1306_v22 = vmul.f32 %v4748_v42, %v1233_v16  ;;  %v1376_v9 = vadd.f32 %v4775_v13, %v1337_v50  ;;  %v952_v16 = vmul.f32 %v4744_v39, %v4832_v0 }
 0x19d   : > { %v1338_v19 = vadd.f32 %v1306_v22, %v1142_v60  ;;  %3717 = vmatprep.mubr.msk.bf16.mxu0 %vm1477_vm0, %v1430_v4  ;;  %v1408_v5 = vmax.f32 %v1376_v9, 0.0  ;;  %v1312_v4 = vmul.f32 %v4748_v42, %v4736_v36 }
 0x19f   : > { %v1377_v25 = vadd.f32 %v4775_v13, %v1338_v19  ;;  %v871_v32 = vpop.permute.xlu1 %870 }
 0x1a0   : > { %v948_v17 = vmul.f32 %v4744_v39, %v871_v32 }
 0x1a1   : > { %v1409_v1 = vmax.f32 %v1377_v25, 0.0 }
 0x1a2   : > { %v1144_v59 = vadd.f32 %v1112_v53, %v948_v17 }
 0x1a3   : > { %v1431_v43 = vpack.c.bf16 %v1409_v1, %v1408_v5  ;;  %v1065_v5 = vpop.permute.xlu0 %1064 }
 0x1a4   : > { %v1041_v40 = vpop.permute.xlu1 %1040  ;;  %v1117_v0 = vmul.f32 %v4740_v37, %v1065_v5 }
 0x1a5   : > { %v1111_v45 = vmul.f32 %v4740_v37, %v1041_v40  ;;  %3718 = vmatmul.mubr.msk.bf16.gmra.mxu0 %vm1477_vm0, %v1431_v43  ;;  %v953_v40 = vmul.f32 %v4744_v39, %v4835_v11 }
 0x1a7   : > { %v1143_v12 = vadd.f32 %v1111_v45, %v947_v38 }
 0x1a9   : > { %v1339_v46 = vadd.f32 %v1307_v44, %v1143_v12  ;;  %v876_v2 = vpop.permute.xlu1 %875 }
 0x1aa   : > { %v949_v51 = vmul.f32 %v4744_v39, %v876_v2 }
 0x1ab   : > { %v1378_v15 = vadd.f32 %v4775_v13, %v1339_v46  ;;  %v1149_v46 = vadd.f32 %v1117_v0, %v953_v40 }
 0x1ac   : > { %v1145_v18 = vadd.f32 %v1113_v56, %v949_v51 }
 0x1ad   : > { %v881_v21 = vpop.permute.xlu1 %880  ;;  %v1410_v29 = vmax.f32 %v1378_v15, 0.0 }
 0x1ae   : > { %v950_v57 = vmul.f32 %v4744_v39, %v881_v21 }
 0x1b2   : > { %v1053_v63 = vpop.permute.xlu1 %1052 }
 0x1b3   : > { %v1114_v35 = vmul.f32 %v4740_v37, %v1053_v63 }
 0x1b5   : > { %v1146_v54 = vadd.f32 %v1114_v35, %v950_v57 }
 0x1b7   : > { %v1241_v26 = vpop.permute.xlu1 %1240  ;;  %v1342_v30 = vadd.f32 %v1310_v55, %v1146_v54 }
 0x1b8   : > { %v1308_v8 = vmul.f32 %v4748_v42, %v1241_v26 }
 0x1b9   : > { %v1381_v58 = vadd.f32 %v4775_v13, %v1342_v30  ;;  %v1077_v30 = vpop.permute.xlu0 %1076 }
 0x1ba   : > { %v1340_v48 = vadd.f32 %v1308_v8, %v1144_v59 }
 0x1bb   : > { %v1245_v24 = vpop.permute.xlu1 %1244  ;;  %v1413_v6 = vmax.f32 %v1381_v58, 0.0  ;;  %v955_v58 = vmul.f32 %v4744_v39, %v4840_v49 }
 0x1bc   : > { %v1379_v27 = vadd.f32 %v4775_v13, %v1340_v48  ;;  %v1309_v10 = vmul.f32 %v4748_v42, %v1245_v24 }
 0x1be   : > { %v1411_v61 = vmax.f32 %v1379_v27, 0.0  ;;  %v1341_v62 = vadd.f32 %v1309_v10, %v1145_v18  ;;  %v1081_v18 = vpop.permute.xlu0 %1080 }
 0x1c0   : > { %v1432_v23 = vpack.c.bf16 %v1411_v61, %v1410_v29  ;;  %v1380_v20 = vadd.f32 %v4775_v13, %v1341_v62  ;;  %v886_v47 = vpop.permute.xlu1 %885 }
 0x1c1   : > { %v951_v1 = vmul.f32 %v4744_v39, %v886_v47 }
 0x1c2   : > { %v1412_v14 = vmax.f32 %v1380_v20, 0.0  ;;  %3721 = vmatprep.mubr.msk.bf16.mxu0 %vm1477_vm0, %v1432_v23  ;;  %v1269_v29 = vpop.permute.xlu0 %1268 }
 0x1c3   : > { %v1315_v62 = vmul.f32 %v4748_v42, %v1269_v29 }
 0x1c4   : > { %v1433_v3 = vpack.c.bf16 %v1413_v6, %v1412_v14 }
 0x1c5   : > { %v1057_v7 = vpop.permute.xlu1 %1056 }
 0x1c6   : > { %3722 = vmatmul.mubr.msk.bf16.gmra.mxu0 %vm1477_vm0, %v1433_v3  ;;  %v1115_v32 = vmul.f32 %v4740_v37, %v1057_v7  ;;  %v1281_v47 = vpop.permute.xlu0 %1280  ;;  %v1120_v7 = vmul.f32 %v4740_v37, %v1077_v30 }
 0x1c8   : > { %v1147_v38 = vadd.f32 %v1115_v32, %v951_v1 }
 0x1c9   : > { %v1061_v50 = vpop.permute.xlu1 %1060 }
 0x1ca   : > { %v1116_v60 = vmul.f32 %v4740_v37, %v1061_v50 }
 0x1cc   : > { %v1148_v22 = vadd.f32 %v1116_v60, %v952_v16  ;;  %v1318_v16 = vmul.f32 %v4748_v42, %v1281_v47 }
 0x1ce   : > { %v1344_v9 = vadd.f32 %v1312_v4, %v1148_v22  ;;  %v901_v19 = vpop.permute.xlu1 %900 }
 0x1cf   : > { %v954_v35 = vmul.f32 %v4744_v39, %v901_v19 }
 0x1d0   : > { %v1383_v36 = vadd.f32 %v4775_v13, %v1344_v9 }
 0x1d2   : > { %v1415_v63 = vmax.f32 %v1383_v36, 0.0 }
 0x1d3   : > { %v1069_v25 = vpop.permute.xlu1 %1068 }
 0x1d4   : > { %v1118_v2 = vmul.f32 %v4740_v37, %v1069_v25  ;;  %v1121_v25 = vmul.f32 %v4740_v37, %v1081_v18 }
 0x1d6   : > { %v1150_v57 = vadd.f32 %v1118_v2, %v954_v35 }
 0x1d8   : > { %v1253_v43 = vpop.permute.xlu1 %1252 }
 0x1d9   : > { %v1311_v45 = vmul.f32 %v4748_v42, %v1253_v43  ;;  %v4964_v43 = vld [vmem:[%s5392_s4] ss:$0 sm:$0xff] }
 0x1db   : > { %v1343_v44 = vadd.f32 %v1311_v45, %v1147_v38 }
 0x1dc   : > { %v1261_v12 = vpop.permute.xlu1 %1260 }
 0x1dd   : > { %v1382_v21 = vadd.f32 %v4775_v13, %v1343_v44  ;;  %v1313_v52 = vmul.f32 %v4748_v42, %v1261_v12 }
 0x1df   : > { %v1414_v11 = vmax.f32 %v1382_v21, 0.0  ;;  %v1345_v53 = vadd.f32 %v1313_v52, %v1149_v46 }
 0x1e0   : > { %v1265_v17 = vpop.permute.xlu1 %1264 }
 0x1e1   : > { %v1434_v54 = vpack.c.bf16 %v1415_v63, %v1414_v11  ;;  %v1314_v55 = vmul.f32 %v4748_v42, %v1265_v17  ;;  %v1384_v41 = vadd.f32 %v4775_v13, %v1345_v53 }
 0x1e3   : > { %v1346_v26 = vadd.f32 %v1314_v55, %v1150_v57  ;;  %3725 = vmatprep.mubr.msk.bf16.mxu0 %vm1477_vm0, %v1434_v54  ;;  %v1416_v51 = vmax.f32 %v1384_v41, 0.0 }
 0x1e5   : > { %v1385_v56 = vadd.f32 %v4775_v13, %v1346_v26  ;;  %v911_v59 = vpop.permute.xlu1 %910 }
 0x1e6   : > { %v956_v6 = vmul.f32 %v4744_v39, %v911_v59 }
 0x1e7   : > { %v1417_v8 = vmax.f32 %v1385_v56, 0.0 }
 0x1e8   : > { %v1152_v4 = vadd.f32 %v1120_v7, %v956_v6 }
 0x1e9   : > { %v1435_v15 = vpack.c.bf16 %v1417_v8, %v1416_v51 }
 0x1ea   : > { %v1073_v48 = vpop.permute.xlu1 %1072 }
 0x1eb   : > { %3726 = vmatmul.mubr.msk.bf16.gmra.mxu0 %vm1477_vm0, %v1435_v15  ;;  %v1119_v27 = vmul.f32 %v4740_v37, %v1073_v48 }
 0x1ed   : > { %v1151_v61 = vadd.f32 %v1119_v27, %v955_v58 }
 0x1ef   : > { %v916_v24 = vpop.permute.xlu1 %915  ;;  %v1347_v3 = vadd.f32 %v1315_v62, %v1151_v61 }
 0x1f0   : > { %v957_v49 = vmul.f32 %v4744_v39, %v916_v24 }
 0x1f1   : > { %v1386_v19 = vadd.f32 %v4775_v13, %v1347_v3 }
 0x1f2   : > { %v1153_v0 = vadd.f32 %v1121_v25, %v957_v49 }
 0x1f3   : > { %v921_v10 = vpop.permute.xlu1 %920  ;;  %v1418_v36 = vmax.f32 %v1386_v19, 0.0 }
 0x1f4   : > { %v958_v14 = vmul.f32 %v4744_v39, %v921_v10 }
 0x1f8   : > { %v1085_v23 = vpop.permute.xlu1 %1084 }
 0x1f9   : > { %v1122_v20 = vmul.f32 %v4740_v37, %v1085_v23 }
 0x1fb   : > { %v1154_v50 = vadd.f32 %v1122_v20, %v958_v14 }
 0x1fd   : > { %v1273_v60 = vpop.permute.xlu1 %1272  ;;  %v1350_v32 = vadd.f32 %v1318_v16, %v1154_v50 }
 0x1fe   : > { %v1316_v22 = vmul.f32 %v4748_v42, %v1273_v60  ;;  %v3703_v9 = vpop.f32.mrf.mxu0 }
 0x1ff   : > { %v1389_v12 = vadd.f32 %v4775_v13, %v1350_v32  ;;  %v1569_v2 = vadd.f32 %v3703_v9, %v4964_v43  ;;  %v4008_v9 = vld [vmem:[#allocation9 + $0x18] sm:$0xff]  }
 0x200   : > { %v1348_v5 = vadd.f32 %v1316_v22, %v1152_v4  ;;  %v1560_v1 = vpop.f32.mrf.mxu0  ;;  %3773 = vmatprep.subr.bf16.mxu0 %v4008_v9 }
 0x201   : > { %v1277_v40 = vpop.permute.xlu1 %1276  ;;  %v1561_v44 = vadd.f32 %v4964_v43, %v1560_v1  ;;  %v1421_v54 = vmax.f32 %v1389_v12, 0.0  ;;  %v1689_v55 = vmax.f32 %v1569_v2, 0.0  ;;  %3774 = vmatpush3.bf16.msra.mxu0 %v4008_v9  ;;  %v4010_v2 = vld [vmem:[#allocation9 + $0x8] sm:$0xff]  }
 0x202   : > { %v1387_v38 = vadd.f32 %v4775_v13, %v1348_v5  ;;  %v1317_v39 = vmul.f32 %v4748_v42, %v1277_v40  ;;  %v3704_v45 = vpop.f32.mrf.mxu0 }
 0x203   : > { %v1572_v37 = vadd.f32 %v3704_v45, %v4964_v43  ;;  %v1687_v17 = vmax.f32 %v1561_v44, 0.0 }
 0x204   : > { %v1419_v46 = vmax.f32 %v1387_v38, 0.0  ;;  %v1349_v21 = vadd.f32 %v1317_v39, %v1153_v0  ;;  %v1563_v52 = vpop.f32.mrf.mxu0 }
 0x205   : > { %v1564_v63 = vadd.f32 %v4964_v43, %v1563_v52  ;;  %v1690_v53 = vmax.f32 %v1572_v37, 0.0 }
 0x206   : > { %v1436_v35 = vpack.c.bf16 %v1419_v46, %v1418_v36  ;;  %v1388_v11 = vadd.f32 %v4775_v13, %v1349_v21  ;;  %v3707_v42 = vpop.f32.mrf.mxu0  ;;  %v4009_v46 = vld [vmem:[#allocation9 + $0x10] sm:$0xff]   ;;  %v4011_v21 = vld [vmem:[#allocation9] sm:$0xff]  }
 0x207   : > { %v1688_v57 = vmax.f32 %v1564_v63, 0.0  ;;  %v1720_v51 = vpack.c.bf16 %v1690_v53, %v1689_v55  ;;  %v1585_v13 = vadd.f32 %v3707_v42, %v4964_v43  ;;  %3775 = vmatprep.subr.bf16.mxu0 %v4009_v46 }
 0x208   : > { %v1420_v41 = vmax.f32 %v1388_v11, 0.0  ;;  %v1576_v26 = vpop.f32.mrf.mxu0  ;;  %3729 = vmatprep.mubr.msk.bf16.mxu0 %vm1477_vm0, %v1436_v35  ;;  %3776 = vmatpush3.bf16.msra.mxu0 %v4009_v46 }
 0x209   : > { %v1719_v56 = vpack.c.bf16 %v1688_v57, %v1687_v17  ;;  %v1577_v15 = vadd.f32 %v4964_v43, %v1576_v26  ;;  %v1693_v29 = vmax.f32 %v1585_v13, 0.0  ;;  %3777 = vmatprep.subr.bf16.mxu0 %v4010_v2 }
 0x20a   : > { %v1437_v59 = vpack.c.bf16 %v1421_v54, %v1420_v41  ;;  %v3708_v8 = vpop.f32.mrf.mxu0 }
 0x20b   : > { %v1588_v30 = vadd.f32 %v3708_v8, %v4964_v43  ;;  %3741 = vmatprep.mubr.msk.bf16.mxu1 %vm1477_vm0, %v1719_v56  ;;  %v1691_v27 = vmax.f32 %v1577_v15, 0.0 }
 0x20c   : > { %v1579_v48 = vpop.f32.mrf.mxu0  ;;  %3730 = vmatmul.mubr.msk.bf16.gmra.mxu0 %vm1477_vm0, %v1437_v59  ;;  %3742 = vmatmul.mubr.msk.bf16.vlgmr.msra.gmra.mxu1 %vm1477_vm0, %v1720_v51 }
 0x20d   : > { %v1580_v24 = vadd.f32 %v4964_v43, %v1579_v48  ;;  %v1694_v18 = vmax.f32 %v1588_v30, 0.0  ;;  %3778 = vmatpush3.bf16.msra.mxu0 %v4010_v2 }
 0x20e   : > { %3779 = vmatprep.subr.bf16.mxu0 %v4011_v21 }
 0x20f   : > { %v1692_v10 = vmax.f32 %v1580_v24, 0.0  ;;  %v1722_v61 = vpack.c.bf16 %v1694_v18, %v1693_v29 }
 0x211   : > { %v1721_v58 = vpack.c.bf16 %v1692_v10, %v1691_v27  ;;  %3780 = vmatpush3.bf16.msra.mxu0 %v4011_v21 }
 0x213   : > { %3745 = vmatprep.mubr.msk.bf16.mxu1 %vm1477_vm0, %v1721_v58 }
 0x214   : > { %3746 = vmatmul.mubr.msk.bf16.gmra.mxu1 %vm1477_vm0, %v1722_v61 }
 0x22b   : > { %v3711_v62 = vpop.f32.mrf.mxu0 }
 0x22c   : > { %v1601_v14 = vadd.f32 %v3711_v62, %v4964_v43 }
 0x22d   : > { %v1592_v23 = vpop.f32.mrf.mxu0 }
 0x22e   : > { %v1593_v47 = vadd.f32 %v4964_v43, %v1592_v23  ;;  %v1697_v4 = vmax.f32 %v1601_v14, 0.0 }
 0x22f   : > { %v3712_v20 = vpop.f32.mrf.mxu0 }
 0x230   : > { %v1604_v6 = vadd.f32 %v3712_v20, %v4964_v43  ;;  %v1695_v16 = vmax.f32 %v1593_v47, 0.0 }
 0x231   : > { %v1595_v3 = vpop.f32.mrf.mxu0 }
 0x232   : > { %v1596_v7 = vadd.f32 %v4964_v43, %v1595_v3  ;;  %v1698_v50 = vmax.f32 %v1604_v6, 0.0 }
 0x234   : > { %v1696_v60 = vmax.f32 %v1596_v7, 0.0  ;;  %v1724_v22 = vpack.c.bf16 %v1698_v50, %v1697_v4 }
 0x236   : > { %v1723_v49 = vpack.c.bf16 %v1696_v60, %v1695_v16 }
 0x238   : > { %3749 = vmatprep.mubr.msk.bf16.mxu1 %vm1477_vm0, %v1723_v49 }
 0x239   : > { %3750 = vmatmul.mubr.msk.bf16.gmra.mxu1 %vm1477_vm0, %v1724_v22 }
 0x240   : > { %v3715_v19 = vpop.f32.mrf.mxu0 }
 0x241   : > { %v1617_v40 = vadd.f32 %v3715_v19, %v4964_v43 }
 0x242   : > { %v1608_v25 = vpop.f32.mrf.mxu0 }
 0x243   : > { %v1609_v5 = vadd.f32 %v4964_v43, %v1608_v25  ;;  %v1701_v44 = vmax.f32 %v1617_v40, 0.0 }
 0x244   : > { %v3716_v32 = vpop.f32.mrf.mxu0 }
 0x245   : > { %v1620_v1 = vadd.f32 %v3716_v32, %v4964_v43  ;;  %v1699_v45 = vmax.f32 %v1609_v5, 0.0 }
 0x246   : > { %v1611_v0 = vpop.f32.mrf.mxu0 }
 0x247   : > { %v1612_v38 = vadd.f32 %v4964_v43, %v1611_v0  ;;  %v1702_v39 = vmax.f32 %v1620_v1, 0.0  ;;  %v5017_v1 = vld [vmem:[%s5394_s6] ss:$0 sm:$0xff] }
 0x249   : > { %v1700_v36 = vmax.f32 %v1612_v38, 0.0  ;;  %v1726_v12 = vpack.c.bf16 %v1702_v39, %v1701_v44 }
 0x24b   : > { %v1725_v37 = vpack.c.bf16 %v1700_v36, %v1699_v45 }
 0x24d   : > { %3753 = vmatprep.mubr.msk.bf16.mxu1 %vm1477_vm0, %v1725_v37 }
 0x24e   : > { %3754 = vmatmul.mubr.msk.bf16.gmra.mxu1 %vm1477_vm0, %v1726_v12 }
 0x265   : > { %v3719_v52 = vpop.f32.mrf.mxu0 }
 0x266   : > { %v1633_v42 = vadd.f32 %v3719_v52, %v4964_v43 }
 0x267   : > { %v1624_v63 = vpop.f32.mrf.mxu0 }
 0x268   : > { %v1625_v11 = vadd.f32 %v4964_v43, %v1624_v63  ;;  %v1705_v26 = vmax.f32 %v1633_v42, 0.0 }
 0x269   : > { %v3720_v35 = vpop.f32.mrf.mxu0 }
 0x26a   : > { %v1636_v53 = vadd.f32 %v3720_v35, %v4964_v43  ;;  %v1703_v55 = vmax.f32 %v1625_v11, 0.0 }
 0x26b   : > { %v1627_v17 = vpop.f32.mrf.mxu0 }
 0x26c   : > { %v1628_v57 = vadd.f32 %v4964_v43, %v1627_v17  ;;  %v1706_v54 = vmax.f32 %v1636_v53, 0.0 }
 0x26e   : > { %v1704_v41 = vmax.f32 %v1628_v57, 0.0  ;;  %v1728_v59 = vpack.c.bf16 %v1706_v54, %v1705_v26 }
 0x270   : > { %v1727_v56 = vpack.c.bf16 %v1704_v41, %v1703_v55 }
 0x272   : > { %3757 = vmatprep.mubr.msk.bf16.mxu1 %vm1477_vm0, %v1727_v56 }
 0x273   : > { %3758 = vmatmul.mubr.msk.bf16.gmra.mxu1 %vm1477_vm0, %v1728_v59 }
 0x286   : > { %v3723_v51 = vpop.f32.mrf.mxu0 }
 0x287   : > { %v1649_v48 = vadd.f32 %v3723_v51, %v4964_v43 }
 0x288   : > { %v1640_v8 = vpop.f32.mrf.mxu0 }
 0x289   : > { %v1641_v30 = vadd.f32 %v4964_v43, %v1640_v8  ;;  %v1709_v58 = vmax.f32 %v1649_v48, 0.0 }
 0x28a   : > { %v3724_v15 = vpop.f32.mrf.mxu0 }
 0x28b   : > { %v1652_v13 = vadd.f32 %v3724_v15, %v4964_v43  ;;  %v1707_v10 = vmax.f32 %v1641_v30, 0.0 }
 0x28c   : > { %v1643_v24 = vpop.f32.mrf.mxu0 }
 0x28d   : > { %v1644_v18 = vadd.f32 %v4964_v43, %v1643_v24  ;;  %v1710_v27 = vmax.f32 %v1652_v13, 0.0 }
 0x28f   : > { %v1708_v29 = vmax.f32 %v1644_v18, 0.0  ;;  %v1730_v62 = vpack.c.bf16 %v1710_v27, %v1709_v58 }
 0x291   : > { %v1729_v61 = vpack.c.bf16 %v1708_v29, %v1707_v10 }
 0x293   : > { %3761 = vmatprep.mubr.msk.bf16.mxu1 %vm1477_vm0, %v1729_v61 }
 0x294   : > { %3762 = vmatmul.mubr.msk.bf16.gmra.mxu1 %vm1477_vm0, %v1730_v62 }
 0x2ab   : > { %v3727_v23 = vpop.f32.mrf.mxu0 }
 0x2ac   : > { %v1665_v3 = vadd.f32 %v3727_v23, %v4964_v43 }
 0x2ad   : > { %v1656_v20 = vpop.f32.mrf.mxu0 }
 0x2ae   : > { %v1657_v6 = vadd.f32 %v4964_v43, %v1656_v20  ;;  %v1713_v49 = vmax.f32 %v1665_v3, 0.0 }
 0x2af   : > { %v3728_v47 = vpop.f32.mrf.mxu0 }
 0x2b0   : > { %v1668_v14 = vadd.f32 %v3728_v47, %v4964_v43  ;;  %v1711_v60 = vmax.f32 %v1657_v6, 0.0 }
 0x2b1   : > { %v1659_v7 = vpop.f32.mrf.mxu0 }
 0x2b2   : > { %v1660_v50 = vadd.f32 %v4964_v43, %v1659_v7  ;;  %v1714_v16 = vmax.f32 %v1668_v14, 0.0 }
 0x2b4   : > { %v1712_v4 = vmax.f32 %v1660_v50, 0.0  ;;  %v1732_v9 = vpack.c.bf16 %v1714_v16, %v1713_v49  ;;  %v4012_v49 = vld [vmem:[#allocation10 + $0x38] sm:$0xff]  }
 0x2b5   : > { %3813 = vmatprep.subr.bf16.mxu1 %v4012_v49 }
 0x2b6   : > { %v1731_v22 = vpack.c.bf16 %v1712_v4, %v1711_v60  ;;  %3814 = vmatpush3.bf16.msra.mxu1 %v4012_v49 }
 0x2b8   : > { %3765 = vmatprep.mubr.msk.bf16.mxu1 %vm1477_vm0, %v1731_v22  ;;  %v4013_v22 = vld [vmem:[#allocation10 + $0x30] sm:$0xff]  }
 0x2b9   : > { %3766 = vmatmul.mubr.msk.bf16.gmra.mxu1 %vm1477_vm0, %v1732_v9  ;;  %3815 = vmatprep.subr.bf16.mxu1 %v4013_v22  ;;  %v4014_v9 = vld [vmem:[#allocation10 + $0x28] sm:$0xff]  }
 0x2ba   : > { %3816 = vmatpush3.bf16.msra.mxu1 %v4013_v22 }
 0x2bb   : > { %3817 = vmatprep.subr.bf16.mxu1 %v4014_v9 }
 0x2be   : > { %3818 = vmatpush3.bf16.msra.mxu1 %v4014_v9 }
 0x2cc   : > { %v3731_v19 = vpop.f32.mrf.mxu0  ;;  %v3743_v25 = vpop.f32.mrf.mxu1 }
 0x2cd   : > { %v1681_v44 = vadd.f32 %v3731_v19, %v4964_v43  ;;  %v1865_v37 = vadd.f32 %v3743_v25, %v5017_v1  ;;  %v4015_v25 = vld [vmem:[#allocation10 + $0x20] sm:$0xff]  }
 0x2ce   : > { %v1672_v32 = vpop.f32.mrf.mxu0  ;;  %v1856_v5 = vpop.f32.mrf.mxu1  ;;  %3819 = vmatprep.subr.bf16.mxu1 %v4015_v25 }
 0x2cf   : > { %v1673_v38 = vadd.f32 %v4964_v43, %v1672_v32  ;;  %v1857_v39 = vadd.f32 %v5017_v1, %v1856_v5  ;;  %v1717_v57 = vmax.f32 %v1681_v44, 0.0  ;;  %v1985_v54 = vmax.f32 %v1865_v37, 0.0  ;;  %3820 = vmatpush3.bf16.msra.mxu1 %v4015_v25 }
 0x2d0   : > { %v3732_v40 = vpop.f32.mrf.mxu0  ;;  %v3744_v0 = vpop.f32.mrf.mxu1 }
 0x2d1   : > { %v1684_v45 = vadd.f32 %v3732_v40, %v4964_v43  ;;  %v1868_v36 = vadd.f32 %v3744_v0, %v5017_v1  ;;  %v1715_v11 = vmax.f32 %v1673_v38, 0.0  ;;  %v1983_v53 = vmax.f32 %v1857_v39, 0.0  ;;  %v4016_v38 = vld [vmem:[#allocation10 + $0x18] sm:$0xff]  }
 0x2d2   : > { %v1675_v12 = vpop.f32.mrf.mxu0  ;;  %v1859_v46 = vpop.f32.mrf.mxu1  ;;  %3821 = vmatprep.subr.bf16.mxu1 %v4016_v38 }
 0x2d3   : > { %v1676_v2 = vadd.f32 %v4964_v43, %v1675_v12  ;;  %v1860_v21 = vadd.f32 %v5017_v1, %v1859_v46  ;;  %v1718_v52 = vmax.f32 %v1684_v45, 0.0  ;;  %v1986_v63 = vmax.f32 %v1868_v36, 0.0  ;;  %3822 = vmatpush3.bf16.msra.mxu1 %v4016_v38  ;;  %v5070_v38 = vld [vmem:[%s5396_s8] ss:$0 sm:$0xff] }
 0x2d4   : > { %v3747_v35 = vpop.f32.mrf.mxu1 }
 0x2d5   : > { %v1716_v42 = vmax.f32 %v1676_v2, 0.0  ;;  %v1984_v17 = vmax.f32 %v1860_v21, 0.0  ;;  %v1734_v56 = vpack.c.bf16 %v1718_v52, %v1717_v57  ;;  %v2016_v59 = vpack.c.bf16 %v1986_v63, %v1985_v54  ;;  %v4017_v52 = vld [vmem:[#allocation10 + $0x10] sm:$0xff]   ;;  %v4018_v63 = vld [vmem:[#allocation10 + $0x8] sm:$0xff]  }
 0x2d6   : > { %v1872_v55 = vpop.f32.mrf.mxu1  ;;  %v1881_v15 = vadd.f32 %v3747_v35, %v5017_v1  ;;  %3823 = vmatprep.subr.bf16.mxu1 %v4017_v52  ;;  %v4019_v35 = vld [vmem:[#allocation10] sm:$0xff]  }
 0x2d7   : > { %v1733_v41 = vpack.c.bf16 %v1716_v42, %v1715_v11  ;;  %v2015_v26 = vpack.c.bf16 %v1984_v17, %v1983_v53  ;;  %v1873_v8 = vadd.f32 %v5017_v1, %v1872_v55  ;;  %3824 = vmatpush3.bf16.msra.mxu1 %v4017_v52 }
 0x2d8   : > { %v3748_v51 = vpop.f32.mrf.mxu1  ;;  %v1989_v27 = vmax.f32 %v1881_v15, 0.0  ;;  %3825 = vmatprep.subr.bf16.mxu1 %v4018_v63 }
 0x2d9   : > { %v1884_v43 = vadd.f32 %v3748_v51, %v5017_v1  ;;  %3769 = vmatprep.mubr.msk.bf16.mxu1 %vm1477_vm0, %v1733_v41  ;;  %3781 = vmatprep.mubr.msk.bf16.mxu0 %vm1477_vm0, %v2015_v26  ;;  %v1987_v24 = vmax.f32 %v1873_v8, 0.0 }
 0x2da   : > { %v1875_v30 = vpop.f32.mrf.mxu1  ;;  %3770 = vmatmul.mubr.msk.bf16.gmra.mxu1 %vm1477_vm0, %v1734_v56  ;;  %3782 = vmatmul.mubr.msk.bf16.vlgmr.msra.gmra.mxu0 %vm1477_vm0, %v2016_v59 }
 0x2db   : > { %v1876_v13 = vadd.f32 %v5017_v1, %v1875_v30  ;;  %v1990_v48 = vmax.f32 %v1884_v43, 0.0  ;;  %3826 = vmatpush3.bf16.msra.mxu1 %v4018_v63 }
 0x2dc   : > { %3827 = vmatprep.subr.bf16.mxu1 %v4019_v35 }
 0x2dd   : > { %v1988_v18 = vmax.f32 %v1876_v13, 0.0  ;;  %v2018_v29 = vpack.c.bf16 %v1990_v48, %v1989_v27 }
 0x2df   : > { %v2017_v10 = vpack.c.bf16 %v1988_v18, %v1987_v24  ;;  %3828 = vmatpush3.bf16.msra.mxu1 %v4019_v35 }
 0x2e1   : > { %3785 = vmatprep.mubr.msk.bf16.mxu0 %vm1477_vm0, %v2017_v10 }
 0x2e2   : > { %3786 = vmatmul.mubr.msk.bf16.gmra.mxu0 %vm1477_vm0, %v2018_v29 }
 0x2f9   : > { %v3751_v58 = vpop.f32.mrf.mxu1 }
 0x2fa   : > { %v1897_v47 = vadd.f32 %v3751_v58, %v5017_v1 }
 0x2fb   : > { %v1888_v61 = vpop.f32.mrf.mxu1 }
 0x2fc   : > { %v1889_v23 = vadd.f32 %v5017_v1, %v1888_v61  ;;  %v1993_v16 = vmax.f32 %v1897_v47, 0.0 }
 0x2fd   : > { %v3752_v62 = vpop.f32.mrf.mxu1 }
 0x2fe   : > { %v1900_v20 = vadd.f32 %v3752_v62, %v5017_v1  ;;  %v1991_v7 = vmax.f32 %v1889_v23, 0.0 }
 0x2ff   : > { %v1891_v6 = vpop.f32.mrf.mxu1 }
 0x300   : > { %v1892_v14 = vadd.f32 %v5017_v1, %v1891_v6  ;;  %v1994_v3 = vmax.f32 %v1900_v20, 0.0 }
 0x302   : > { %v1992_v50 = vmax.f32 %v1892_v14, 0.0  ;;  %v2020_v4 = vpack.c.bf16 %v1994_v3, %v1993_v16 }
 0x304   : > { %v2019_v60 = vpack.c.bf16 %v1992_v50, %v1991_v7 }
 0x306   : > { %3789 = vmatprep.mubr.msk.bf16.mxu0 %vm1477_vm0, %v2019_v60 }
 0x307   : > { %3790 = vmatmul.mubr.msk.bf16.gmra.mxu0 %vm1477_vm0, %v2020_v4 }
 0x30e   : > { %v3755_v19 = vpop.f32.mrf.mxu1 }
 0x30f   : > { %v1913_v39 = vadd.f32 %v3755_v19, %v5017_v1 }
 0x310   : > { %v1904_v32 = vpop.f32.mrf.mxu1 }
 0x311   : > { %v1905_v40 = vadd.f32 %v5017_v1, %v1904_v32  ;;  %v1997_v46 = vmax.f32 %v1913_v39, 0.0 }
 0x312   : > { %v3756_v5 = vpop.f32.mrf.mxu1 }
 0x313   : > { %v1916_v0 = vadd.f32 %v3756_v5, %v5017_v1  ;;  %v1995_v37 = vmax.f32 %v1905_v40, 0.0 }
 0x314   : > { %v1907_v45 = vpop.f32.mrf.mxu1 }
 0x315   : > { %v1908_v36 = vadd.f32 %v5017_v1, %v1907_v45  ;;  %v1998_v44 = vmax.f32 %v1916_v0, 0.0 }
 0x317   : > { %v1996_v12 = vmax.f32 %v1908_v36, 0.0  ;;  %v2022_v21 = vpack.c.bf16 %v1998_v44, %v1997_v46 }
 0x319   : > { %v2021_v2 = vpack.c.bf16 %v1996_v12, %v1995_v37 }
 0x31b   : > { %3793 = vmatprep.mubr.msk.bf16.mxu0 %vm1477_vm0, %v2021_v2 }
 0x31c   : > { %3794 = vmatmul.mubr.msk.bf16.gmra.mxu0 %vm1477_vm0, %v2022_v21 }
 0x333   : > { %v3759_v11 = vpop.f32.mrf.mxu1 }
 0x334   : > { %v1929_v54 = vadd.f32 %v3759_v11, %v5017_v1 }
 0x335   : > { %v1920_v53 = vpop.f32.mrf.mxu1 }
 0x336   : > { %v1921_v17 = vadd.f32 %v5017_v1, %v1920_v53  ;;  %v2001_v51 = vmax.f32 %v1929_v54, 0.0 }
 0x337   : > { %v3760_v42 = vpop.f32.mrf.mxu1 }
 0x338   : > { %v1932_v57 = vadd.f32 %v3760_v42, %v5017_v1  ;;  %v1999_v56 = vmax.f32 %v1921_v17, 0.0 }
 0x339   : > { %v1923_v55 = vpop.f32.mrf.mxu1 }
 0x33a   : > { %v1924_v41 = vadd.f32 %v5017_v1, %v1923_v55  ;;  %v2002_v26 = vmax.f32 %v1932_v57, 0.0 }
 0x33c   : > { %v2000_v59 = vmax.f32 %v1924_v41, 0.0  ;;  %v2024_v43 = vpack.c.bf16 %v2002_v26, %v2001_v51 }
 0x33e   : > { %v2023_v8 = vpack.c.bf16 %v2000_v59, %v1999_v56 }
 0x340   : > { %3797 = vmatprep.mubr.msk.bf16.mxu0 %vm1477_vm0, %v2023_v8 }
 0x341   : > { %3798 = vmatmul.mubr.msk.bf16.gmra.mxu0 %vm1477_vm0, %v2024_v43 }
 0x354   : > { %v3763_v15 = vpop.f32.mrf.mxu1 }
 0x355   : > { %v1945_v18 = vadd.f32 %v3763_v15, %v5017_v1 }
 0x356   : > { %v1936_v30 = vpop.f32.mrf.mxu1 }
 0x357   : > { %v1937_v48 = vadd.f32 %v5017_v1, %v1936_v30  ;;  %v2005_v62 = vmax.f32 %v1945_v18, 0.0 }
 0x358   : > { %v3764_v13 = vpop.f32.mrf.mxu1 }
 0x359   : > { %v1948_v24 = vadd.f32 %v3764_v13, %v5017_v1  ;;  %v2003_v58 = vmax.f32 %v1937_v48, 0.0 }
 0x35a   : > { %v1939_v27 = vpop.f32.mrf.mxu1 }
 0x35b   : > { %v1940_v10 = vadd.f32 %v5017_v1, %v1939_v27  ;;  %v2006_v29 = vmax.f32 %v1948_v24, 0.0 }
 0x35d   : > { %v2004_v61 = vmax.f32 %v1940_v10, 0.0  ;;  %v2026_v20 = vpack.c.bf16 %v2006_v29, %v2005_v62 }
 0x35f   : > { %v2025_v23 = vpack.c.bf16 %v2004_v61, %v2003_v58 }
 0x361   : > { %3801 = vmatprep.mubr.msk.bf16.mxu0 %vm1477_vm0, %v2025_v23 }
 0x362   : > { %3802 = vmatmul.mubr.msk.bf16.gmra.mxu0 %vm1477_vm0, %v2026_v20 }
 0x379   : > { %v3767_v47 = vpop.f32.mrf.mxu1 }
 0x37a   : > { %v1961_v50 = vadd.f32 %v3767_v47, %v5017_v1 }
 0x37b   : > { %v1952_v6 = vpop.f32.mrf.mxu1 }
 0x37c   : > { %v1953_v3 = vadd.f32 %v5017_v1, %v1952_v6  ;;  %v2009_v9 = vmax.f32 %v1961_v50, 0.0 }
 0x37d   : > { %v3768_v14 = vpop.f32.mrf.mxu1 }
 0x37e   : > { %v1964_v7 = vadd.f32 %v3768_v14, %v5017_v1  ;;  %v2007_v49 = vmax.f32 %v1953_v3, 0.0 }
 0x37f   : > { %v1955_v16 = vpop.f32.mrf.mxu1 }
 0x380   : > { %v1956_v60 = vadd.f32 %v5017_v1, %v1955_v16  ;;  %v2010_v4 = vmax.f32 %v1964_v7, 0.0 }
 0x382   : > { %v2008_v22 = vmax.f32 %v1956_v60, 0.0  ;;  %v2028_v25 = vpack.c.bf16 %v2010_v4, %v2009_v9 }
 0x384   : > { %v2027_v19 = vpack.c.bf16 %v2008_v22, %v2007_v49 }
 0x386   : > { %3805 = vmatprep.mubr.msk.bf16.mxu0 %vm1477_vm0, %v2027_v19 }
 0x387   : > { %3806 = vmatmul.mubr.msk.bf16.gmra.mxu0 %vm1477_vm0, %v2028_v25 }
 0x39a   : > { %v3771_v32 = vpop.f32.mrf.mxu1  ;;  %v3783_v5 = vpop.f32.mrf.mxu0 }
 0x39b   : > { %v1977_v46 = vadd.f32 %v3771_v32, %v5017_v1  ;;  %v2161_v2 = vadd.f32 %v3783_v5, %v5070_v38 }
 0x39c   : > { %v1968_v40 = vpop.f32.mrf.mxu1  ;;  %v2152_v0 = vpop.f32.mrf.mxu0 }
 0x39d   : > { %v1969_v36 = vadd.f32 %v5017_v1, %v1968_v40  ;;  %v2153_v44 = vadd.f32 %v5070_v38, %v2152_v0  ;;  %v2013_v41 = vmax.f32 %v1977_v46, 0.0  ;;  %v2281_v26 = vmax.f32 %v2161_v2, 0.0 }
 0x39e   : > { %v3772_v39 = vpop.f32.mrf.mxu1  ;;  %v3784_v45 = vpop.f32.mrf.mxu0 }
 0x39f   : > { %v1980_v37 = vadd.f32 %v3772_v39, %v5017_v1  ;;  %v2164_v12 = vadd.f32 %v3784_v45, %v5070_v38  ;;  %v2011_v17 = vmax.f32 %v1969_v36, 0.0  ;;  %v2279_v57 = vmax.f32 %v2153_v44, 0.0 }
 0x3a0   : > { %v1971_v21 = vpop.f32.mrf.mxu1  ;;  %v2155_v52 = vpop.f32.mrf.mxu0 }
 0x3a1   : > { %v1972_v63 = vadd.f32 %v5017_v1, %v1971_v21  ;;  %v2156_v35 = vadd.f32 %v5070_v38, %v2155_v52  ;;  %v2014_v11 = vmax.f32 %v1980_v37, 0.0  ;;  %v2282_v53 = vmax.f32 %v2164_v12, 0.0 }
 0x3a2   : > { %v3787_v42 = vpop.f32.mrf.mxu0 }
 0x3a3   : > { %v2012_v54 = vmax.f32 %v1972_v63, 0.0  ;;  %v2280_v55 = vmax.f32 %v2156_v35, 0.0  ;;  %v2030_v8 = vpack.c.bf16 %v2014_v11, %v2013_v41  ;;  %v2312_v43 = vpack.c.bf16 %v2282_v53, %v2281_v26 }
 0x3a4   : > { %v2168_v56 = vpop.f32.mrf.mxu0  ;;  %v2177_v13 = vadd.f32 %v3787_v42, %v5070_v38 }
 0x3a5   : > { %v2029_v59 = vpack.c.bf16 %v2012_v54, %v2011_v17  ;;  %v2311_v51 = vpack.c.bf16 %v2280_v55, %v2279_v57  ;;  %v2169_v30 = vadd.f32 %v5070_v38, %v2168_v56 }
 0x3a6   : > { %v3788_v15 = vpop.f32.mrf.mxu0  ;;  %v2285_v29 = vmax.f32 %v2177_v13, 0.0 }
 0x3a7   : > { %v2180_v1 = vadd.f32 %v3788_v15, %v5070_v38  ;;  %3809 = vmatprep.mubr.msk.bf16.mxu0 %vm1477_vm0, %v2029_v59  ;;  %3829 = vmatprep.mubr.bf16.mxu1 %v2311_v51  ;;  %v2283_v27 = vmax.f32 %v2169_v30, 0.0 }
 0x3a8   : > { %v2171_v48 = vpop.f32.mrf.mxu0  ;;  %3810 = vmatmul.mubr.msk.bf16.gmra.mxu0 %vm1477_vm0, %v2030_v8  ;;  %3830 = vmatmul.mubr.bf16.vlgmr.msra.gmra.mxu1 %v2312_v43 }
 0x3a9   : > { %v2172_v24 = vadd.f32 %v5070_v38, %v2171_v48  ;;  %v2286_v18 = vmax.f32 %v2180_v1, 0.0 }
 0x3ab   : > { %v2284_v10 = vmax.f32 %v2172_v24, 0.0  ;;  %v2314_v61 = vpack.c.bf16 %v2286_v18, %v2285_v29 }
 0x3ad   : > { %v2313_v58 = vpack.c.bf16 %v2284_v10, %v2283_v27 }
 0x3af   : > { %3833 = vmatprep.mubr.bf16.mxu1 %v2313_v58 }
 0x3b0   : > { %3834 = vmatmul.mubr.bf16.gmra.mxu1 %v2314_v61 }
 0x3c7   : > { %v3791_v62 = vpop.f32.mrf.mxu0 }
 0x3c8   : > { %v2193_v14 = vadd.f32 %v3791_v62, %v5070_v38 }
 0x3c9   : > { %v2184_v23 = vpop.f32.mrf.mxu0 }
 0x3ca   : > { %v2185_v47 = vadd.f32 %v5070_v38, %v2184_v23  ;;  %v2289_v4 = vmax.f32 %v2193_v14, 0.0 }
 0x3cb   : > { %v3792_v20 = vpop.f32.mrf.mxu0 }
 0x3cc   : > { %v2196_v6 = vadd.f32 %v3792_v20, %v5070_v38  ;;  %v2287_v16 = vmax.f32 %v2185_v47, 0.0 }
 0x3cd   : > { %v2187_v3 = vpop.f32.mrf.mxu0 }
 0x3ce   : > { %v2188_v7 = vadd.f32 %v5070_v38, %v2187_v3  ;;  %v2290_v50 = vmax.f32 %v2196_v6, 0.0 }
 0x3d0   : > { %v2288_v60 = vmax.f32 %v2188_v7, 0.0  ;;  %v2316_v22 = vpack.c.bf16 %v2290_v50, %v2289_v4 }
 0x3d2   : > { %v2315_v49 = vpack.c.bf16 %v2288_v60, %v2287_v16 }
 0x3d4   : > { %3837 = vmatprep.mubr.bf16.mxu1 %v2315_v49 }
 0x3d5   : > { %3838 = vmatmul.mubr.bf16.gmra.mxu1 %v2316_v22 }
 0x3dc   : > { %v3795_v9 = vpop.f32.mrf.mxu0 }
 0x3dd   : > { %v2209_v40 = vadd.f32 %v3795_v9, %v5070_v38 }
 0x3de   : > { %v2200_v19 = vpop.f32.mrf.mxu0 }
 0x3df   : > { %v2201_v32 = vadd.f32 %v5070_v38, %v2200_v19  ;;  %v2293_v37 = vmax.f32 %v2209_v40, 0.0 }
 0x3e0   : > { %v3796_v25 = vpop.f32.mrf.mxu0 }
 0x3e1   : > { %v2212_v5 = vadd.f32 %v3796_v25, %v5070_v38  ;;  %v2291_v36 = vmax.f32 %v2201_v32, 0.0 }
 0x3e2   : > { %v2203_v0 = vpop.f32.mrf.mxu0 }
 0x3e3   : > { %v2204_v39 = vadd.f32 %v5070_v38, %v2203_v0  ;;  %v2294_v45 = vmax.f32 %v2212_v5, 0.0 }
 0x3e5   : > { %v2292_v44 = vmax.f32 %v2204_v39, 0.0  ;;  %v2318_v46 = vpack.c.bf16 %v2294_v45, %v2293_v37 }
 0x3e7   : > { %v2317_v12 = vpack.c.bf16 %v2292_v44, %v2291_v36 }
 0x3e9   : > { %3841 = vmatprep.mubr.bf16.mxu1 %v2317_v12 }
 0x3ea   : > { %3842 = vmatmul.mubr.bf16.gmra.mxu1 %v2318_v46 }
 0x401   : > { %v3799_v2 = vpop.f32.mrf.mxu0 }
 0x402   : > { %v2225_v11 = vadd.f32 %v3799_v2, %v5070_v38 }
 0x403   : > { %v2216_v21 = vpop.f32.mrf.mxu0 }
 0x404   : > { %v2217_v63 = vadd.f32 %v5070_v38, %v2216_v21  ;;  %v2297_v55 = vmax.f32 %v2225_v11, 0.0 }
 0x405   : > { %v3800_v52 = vpop.f32.mrf.mxu0 }
 0x406   : > { %v2228_v35 = vadd.f32 %v3800_v52, %v5070_v38  ;;  %v2295_v57 = vmax.f32 %v2217_v63, 0.0 }
 0x407   : > { %v2219_v53 = vpop.f32.mrf.mxu0 }
 0x408   : > { %v2220_v42 = vadd.f32 %v5070_v38, %v2219_v53  ;;  %v2298_v17 = vmax.f32 %v2228_v35, 0.0 }
 0x40a   : > { %v2296_v54 = vmax.f32 %v2220_v42, 0.0  ;;  %v2320_v26 = vpack.c.bf16 %v2298_v17, %v2297_v55 }
 0x40c   : > { %v2319_v41 = vpack.c.bf16 %v2296_v54, %v2295_v57 }
 0x40e   : > { %3845 = vmatprep.mubr.bf16.mxu1 %v2319_v41 }
 0x40f   : > { %3846 = vmatmul.mubr.bf16.gmra.mxu1 %v2320_v26 }
 0x422   : > { %v3803_v56 = vpop.f32.mrf.mxu0 }
 0x423   : > { %v2241_v15 = vadd.f32 %v3803_v56, %v5070_v38 }
 0x424   : > { %v2232_v59 = vpop.f32.mrf.mxu0 }
 0x425   : > { %v2233_v8 = vadd.f32 %v5070_v38, %v2232_v59  ;;  %v2301_v18 = vmax.f32 %v2241_v15, 0.0 }
 0x426   : > { %v3804_v51 = vpop.f32.mrf.mxu0 }
 0x427   : > { %v2244_v43 = vadd.f32 %v3804_v51, %v5070_v38  ;;  %v2299_v48 = vmax.f32 %v2233_v8, 0.0  ;;  %v5115_v8 = vld [vmem:[%s5398_s10] ss:$0 sm:$0xff] }
 0x428   : > { %v2235_v30 = vpop.f32.mrf.mxu0 }
 0x429   : > { %v2236_v1 = vadd.f32 %v5070_v38, %v2235_v30  ;;  %v2302_v13 = vmax.f32 %v2244_v43, 0.0 }
 0x42b   : > { %v2300_v24 = vmax.f32 %v2236_v1, 0.0  ;;  %v2322_v10 = vpack.c.bf16 %v2302_v13, %v2301_v18 }
 0x42d   : > { %v2321_v27 = vpack.c.bf16 %v2300_v24, %v2299_v48 }
 0x42f   : > { %3849 = vmatprep.mubr.bf16.mxu1 %v2321_v27 }
 0x430   : > { %3850 = vmatmul.mubr.bf16.gmra.mxu1 %v2322_v10 }
 0x447   : > { %v3807_v29 = vpop.f32.mrf.mxu0 }
 0x448   : > { %v2257_v20 = vadd.f32 %v3807_v29, %v5070_v38 }
 0x449   : > { %v2248_v58 = vpop.f32.mrf.mxu0 }
 0x44a   : > { %v2249_v62 = vadd.f32 %v5070_v38, %v2248_v58  ;;  %v2305_v50 = vmax.f32 %v2257_v20, 0.0 }
 0x44b   : > { %v3808_v61 = vpop.f32.mrf.mxu0 }
 0x44c   : > { %v2260_v23 = vadd.f32 %v3808_v61, %v5070_v38  ;;  %v2303_v3 = vmax.f32 %v2249_v62, 0.0 }
 0x44d   : > { %v2251_v47 = vpop.f32.mrf.mxu0 }
 0x44e   : > { %v2252_v6 = vadd.f32 %v5070_v38, %v2251_v47  ;;  %v2306_v14 = vmax.f32 %v2260_v23, 0.0 }
 0x450   : > { %v2304_v7 = vmax.f32 %v2252_v6, 0.0  ;;  %v2324_v60 = vpack.c.bf16 %v2306_v14, %v2305_v50 }
 0x452   : > { %v2323_v16 = vpack.c.bf16 %v2304_v7, %v2303_v3 }
 0x454   : > { %3853 = vmatprep.mubr.bf16.mxu1 %v2323_v16 }
 0x455   : > { %3854 = vmatmul.mubr.bf16.gmra.mxu1 %v2324_v60 }
 0x468   : > { %v3811_v4 = vpop.f32.mrf.mxu0  ;;  %v3831_v37 = vpop.f32.mrf.mxu1 }
 0x469   : > { %v2273_v25 = vadd.f32 %v3811_v4, %v5070_v38  ;;  %v2441_v24 = vadd.f32 %v3831_v37, %v5115_v8 }
 0x46a   : > { %v2264_v49 = vpop.f32.mrf.mxu0  ;;  %v2432_v12 = vpop.f32.mrf.mxu1 }
 0x46b   : > { %v2265_v9 = vadd.f32 %v5070_v38, %v2264_v49  ;;  %v2309_v45 = vmax.f32 %v2273_v25, 0.0  ;;  %v2433_v13 = vadd.f32 %v5115_v8, %v2432_v12  ;;  %v2561_v23 = vmax.f32 %v2441_v24, 0.0 }
 0x46c   : > { %v3812_v22 = vpop.f32.mrf.mxu0  ;;  %v3832_v46 = vpop.f32.mrf.mxu1 }
 0x46d   : > { %v2276_v19 = vadd.f32 %v3812_v22, %v5070_v38  ;;  %v2307_v0 = vmax.f32 %v2265_v9, 0.0  ;;  %v2444_v30 = vadd.f32 %v3832_v46, %v5115_v8  ;;  %v2559_v58 = vmax.f32 %v2433_v13, 0.0 }
 0x46e   : > { %v2267_v32 = vpop.f32.mrf.mxu0  ;;  %v2435_v2 = vpop.f32.mrf.mxu1 }
 0x46f   : > { %v2268_v5 = vadd.f32 %v5070_v38, %v2267_v32  ;;  %v2310_v40 = vmax.f32 %v2276_v19, 0.0  ;;  %v2436_v43 = vadd.f32 %v5115_v8, %v2435_v2  ;;  %v2562_v10 = vmax.f32 %v2444_v30, 0.0 }
 0x470   : > { %v3835_v21 = vpop.f32.mrf.mxu1  ;;  %v2592_v7 = vmax.f32 %v2559_v58, %v2561_v23 }
 0x471   : > { %v2308_v39 = vmax.f32 %v2268_v5, 0.0  ;;  %v2326_v44 = vpack.c.bf16 %v2310_v40, %v2309_v45  ;;  %v2560_v48 = vmax.f32 %v2436_v43, 0.0  ;;  %v2457_v14 = vadd.f32 %v3835_v21, %v5115_v8 }
 0x472   : > { %v2448_v52 = vpop.f32.mrf.mxu1 }
 0x473   : > { %v2325_v36 = vpack.c.bf16 %v2308_v39, %v2307_v0  ;;  %v2449_v18 = vadd.f32 %v5115_v8, %v2448_v52  ;;  %v2593_v61 = vmax.f32 %v2560_v48, %v2562_v10  ;;  %v2565_v22 = vmax.f32 %v2457_v14, 0.0 }
 0x474   : > { %v3836_v63 = vpop.f32.mrf.mxu1 }
 0x475   : > { %3857 = vmatprep.mubr.bf16.mxu1 %v2325_v36  ;;  %v2460_v62 = vadd.f32 %v3836_v63, %v5115_v8  ;;  %v2563_v20 = vmax.f32 %v2449_v18, 0.0 }
 0x476   : > { %3858 = vmatmul.mubr.bf16.gmra.mxu1 %v2326_v44  ;;  %v2451_v35 = vpop.f32.mrf.mxu1 }
 0x477   : > { %v2452_v1 = vadd.f32 %v5115_v8, %v2451_v35  ;;  %v2566_v60 = vmax.f32 %v2460_v62, 0.0  ;;  %v2594_v4 = vmax.f32 %v2592_v7, %v2563_v20 }
 0x479   : > { %v2564_v29 = vmax.f32 %v2452_v1, 0.0  ;;  %v2596_v39 = vmax.f32 %v2594_v4, %v2565_v22 }
 0x47b   : > { %v2595_v3 = vmax.f32 %v2593_v61, %v2564_v29 }
 0x47d   : > { %v2597_v9 = vmax.f32 %v2595_v3, %v2566_v60 }
 0x495   : > { %v3839_v11 = vpop.f32.mrf.mxu1 }
 0x496   : > { %v2473_v0 = vadd.f32 %v3839_v11, %v5115_v8 }
 0x497   : > { %v2464_v53 = vpop.f32.mrf.mxu1 }
 0x498   : > { %v2465_v50 = vadd.f32 %v5115_v8, %v2464_v53  ;;  %v2569_v35 = vmax.f32 %v2473_v0, 0.0 }
 0x499   : > { %v3840_v42 = vpop.f32.mrf.mxu1 }
 0x49a   : > { %v2567_v19 = vmax.f32 %v2465_v50, 0.0  ;;  %v2476_v25 = vadd.f32 %v3840_v42, %v5115_v8 }
 0x49b   : > { %v2467_v38 = vpop.f32.mrf.mxu1 }
 0x49c   : > { %v2468_v47 = vadd.f32 %v5115_v8, %v2467_v38  ;;  %v2598_v46 = vmax.f32 %v2596_v39, %v2567_v19  ;;  %v2570_v2 = vmax.f32 %v2476_v25, 0.0 }
 0x49e   : > { %v2568_v49 = vmax.f32 %v2468_v47, 0.0  ;;  %v2600_v43 = vmax.f32 %v2598_v46, %v2569_v35 }
 0x4a0   : > { %v2599_v45 = vmax.f32 %v2597_v9, %v2568_v49 }
 0x4aa   : > { %v5110_v17 = vpop.f32.mrf.mxu1 }
 0x4ac   : > { %v2480_v57 = vpop.f32.mrf.mxu1 }
 0x4ad   : > { %v2481_v36 = vadd.f32 %v5115_v8, %v2480_v57  ;;  %v2601_v57 = vmax.f32 %v2599_v45, %v2570_v2 }
 0x4ae   : > { %v3844_v54 = vpop.f32.mrf.mxu1 }
 0x4af   : > { %v2571_v42 = vmax.f32 %v2481_v36, 0.0  ;;  %v2492_v38 = vadd.f32 %v3844_v54, %v5115_v8 }
 0x4b0   : > { %v2483_v55 = vpop.f32.mrf.mxu1 }
 0x4b1   : > { %v2484_v32 = vadd.f32 %v5115_v8, %v2483_v55  ;;  %v2602_v18 = vmax.f32 %v2600_v43, %v2571_v42  ;;  %v2574_v10 = vmax.f32 %v2492_v38, 0.0 }
 0x4b3   : > { %v2572_v21 = vmax.f32 %v2484_v32, 0.0 }
 0x4cf   : > { %v3847_v41 = vpop.f32.mrf.mxu1 }
 0x4d0   : > { %v2505_v44 = vadd.f32 %v3847_v41, %v5115_v8 }
 0x4d1   : > { %v2496_v26 = vpop.f32.mrf.mxu1 }
 0x4d2   : > { %v2497_v5 = vadd.f32 %v5115_v8, %v2496_v26  ;;  %v2577_v55 = vmax.f32 %v2505_v44, 0.0 }
 0x4d3   : > { %v3848_v56 = vpop.f32.mrf.mxu1 }
 0x4d4   : > { %v2575_v52 = vmax.f32 %v2497_v5, 0.0  ;;  %v2508_v53 = vadd.f32 %v3848_v56, %v5115_v8 }
 0x4d5   : > { %v2499_v59 = vpop.f32.mrf.mxu1 }
 0x4d6   : > { %v2500_v37 = vadd.f32 %v5115_v8, %v2499_v59  ;;  %v2489_v59 = vadd.f32 %v5110_v17, %v5115_v8  ;;  %v2613_v30 = vmax.f32 %v2575_v52, %v2577_v55  ;;  %v2578_v13 = vmax.f32 %v2508_v53, 0.0 }
 0x4d8   : > { %v2576_v41 = vmax.f32 %v2500_v37, 0.0  ;;  %v2573_v62 = vmax.f32 %v2489_v59, 0.0 }
 0x4da   : > { %v2614_v54 = vmax.f32 %v2576_v41, %v2578_v13 }
 0x4f0   : > { %v3851_v51 = vpop.f32.mrf.mxu1 }
 0x4f1   : > { %v2521_v48 = vadd.f32 %v3851_v51, %v5115_v8 }
 0x4f2   : > { %v2512_v15 = vpop.f32.mrf.mxu1 }
 0x4f3   : > { %v2513_v12 = vadd.f32 %v5115_v8, %v2512_v15  ;;  %v2603_v15 = vmax.f32 %v2601_v57, %v2572_v21  ;;  %v2581_v23 = vmax.f32 %v2521_v48, 0.0 }
 0x4f4   : > { %v3852_v27 = vpop.f32.mrf.mxu1 }
 0x4f5   : > { %v2579_v26 = vmax.f32 %v2513_v12, 0.0  ;;  %v2524_v58 = vadd.f32 %v3852_v27, %v5115_v8  ;;  %v2605_v17 = vmax.f32 %v2603_v15, %v2574_v10  ;;  %v2591_v15 = vld [vmem:[#allocation2] sm:$0x3] }
 0x4f6   : > { %v2515_v6 = vpop.f32.mrf.mxu1 }
 0x4f7   : > { %v2516_v11 = vadd.f32 %v5115_v8, %v2515_v6  ;;  %v2615_v29 = vmax.f32 %v2613_v30, %v2579_v26  ;;  %v2604_v6 = vmax.f32 %v2602_v18, %v2573_v62  ;;  %v2582_v3 = vmax.f32 %v2524_v58, 0.0 }
 0x4f9   : > { %v2580_v56 = vmax.f32 %v2516_v11, 0.0  ;;  %v2617_v7 = vmax.f32 %v2615_v29, %v2581_v23  ;;  %v2606_v60 = vmax.f32 %v2604_v6, %v2605_v17 }
 0x4fb   : > { %v2616_v20 = vmax.f32 %v2614_v54, %v2580_v56 }
 0x4fd   : > { %v2618_v27 = vmax.f32 %v2616_v20, %v2582_v3 }
 0x515   : > { %v3855_v16 = vpop.f32.mrf.mxu1 }
 0x516   : > { %v2537_v51 = vadd.f32 %v3855_v16, %v5115_v8 }
 0x517   : > { %v2528_v40 = vpop.f32.mrf.mxu1 }
 0x518   : > { %v2529_v24 = vadd.f32 %v5115_v8, %v2528_v40  ;;  %v2585_v25 = vmax.f32 %v2537_v51, 0.0  ;;  %v2607_v40 = vrot.slane %v2606_v60, 4 }
 0x519   : > { %v3856_v63 = vpop.f32.mrf.mxu1 }
 0x51a   : > { %v2583_v47 = vmax.f32 %v2529_v24, 0.0  ;;  %v2540_v4 = vadd.f32 %v3856_v63, %v5115_v8  ;;  %v2608_v2 = vmax.f32 %v2606_v60, %v2607_v40 }
 0x51b   : > { %v2531_v1 = vpop.f32.mrf.mxu1 }
 0x51c   : > { %v2532_v61 = vadd.f32 %v5115_v8, %v2531_v1  ;;  %v2619_v22 = vmax.f32 %v2617_v7, %v2583_v47  ;;  %v2586_v0 = vmax.f32 %v2540_v4, 0.0  ;;  %v2609_v11 = vrot.slane %v2608_v2, 2 }
 0x51e   : > { %v2584_v50 = vmax.f32 %v2532_v61, 0.0  ;;  %v2621_v16 = vmax.f32 %v2619_v22, %v2585_v25  ;;  %v2610_v57 = vmax.f32 %v2608_v2, %v2609_v11 }
 0x520   : > { %v2620_v32 = vmax.f32 %v2618_v27, %v2584_v50  ;;  %v2611_v26 = vrot.slane %v2610_v57, 1 }
 0x522   : > { %v2622_v46 = vmax.f32 %v2620_v32, %v2586_v0 }
 0x536   : > { %v3859_v14 = vpop.f32.mrf.mxu1 }
 0x537   : > { %v2553_v45 = vadd.f32 %v3859_v14, %v5115_v8 }
 0x538   : > { %v2544_v49 = vpop.f32.mrf.mxu1 }
 0x539   : > { %v2545_v9 = vadd.f32 %v5115_v8, %v2544_v49  ;;  %v2589_v21 = vmax.f32 %v2553_v45, 0.0 }
 0x53a   : > { %v3860_v19 = vpop.f32.mrf.mxu1 }
 0x53b   : > { %v2587_v5 = vmax.f32 %v2545_v9, 0.0  ;;  %v2556_v36 = vadd.f32 %v3860_v19, %v5115_v8 }
 0x53c   : > { %v2547_v39 = vpop.f32.mrf.mxu1 }
 0x53d   : > { %v2548_v44 = vadd.f32 %v5115_v8, %v2547_v39  ;;  %v2623_v37 = vmax.f32 %v2621_v16, %v2587_v5  ;;  %v2590_v52 = vmax.f32 %v2556_v36, 0.0  ;;  %v2612_v8 = vmax.f32 %v2610_v57, %v2611_v26 }
 0x53f   : > { %v2588_v12 = vmax.f32 %v2548_v44, 0.0  ;;  %v2625_v35 = vmax.f32 %v2623_v37, %v2589_v21 }
 0x541   : > { %v2624_v63 = vmax.f32 %v2622_v46, %v2588_v12 }
 0x543   : > { %v2626_v53 = vmax.f32 %v2624_v63, %v2590_v52 }
 0x545   : > { %v2627_v42 = vmax.f32 %v2625_v35, %v2626_v53 }
 0x547   : > { %v2628_v38 = vrot.slane %v2627_v42, 4 }
 0x549   : > { %v2629_v55 = vmax.f32 %v2627_v42, %v2628_v38 }
 0x54b   : > { %v2630_v41 = vrot.slane %v2629_v55, 2 }
 0x54d   : > { %v2631_v59 = vmax.f32 %v2629_v55, %v2630_v41 }
 0x54f   : > { %v2632_v43 = vrot.slane %v2631_v59, 1 }
 0x551   : > { %v2633_v30 = vmax.f32 %v2631_v59, %v2632_v43 }
 0x552   : > { %2644 = sbr.rel (%p3494_p7) target bundleno = 1805 (0x70d), region = 142 }
 0x553   : > { %v2637_v1 = vsel %vm2636_vm1, %v2633_v30, %v2612_v8 }
 0x554   : > { %v2639_v13 = vmax.f32 %v2591_v15, %v2637_v1 }
 0x556   : > { %2640 = vst [vmem:[#allocation2] sm:$0x3] %v2639_v13 }
 0x557   : > { %v4020_v48 = vld [vmem:[%s5399_s11 + $0xe4] ss:$16 sps:$4 sm:$0xff]   ;;  %v4022_v56 = vld [vmem:[%s5399_s11 + $0xec] ss:$16 sps:$4 sm:$0xff]   ;;  %v4294_v24 = vmov 0  }
 0x558   : > { %2893 = vmatprep.mubr.bf16.mxu0 %v4294_v24  ;;  %2934 = vmatprep.mubr.bf16.mxu1 %v4294_v24  ;;  %v4024_v18 = vld [vmem:[%s5399_s11 + $0xe0] ss:$16 sps:$4 sm:$0xff]   ;;  %v4025_v10 = vld [vmem:[%s5399_s11 + $0xe8] ss:$16 sps:$4 sm:$0xff]   ;;  %v4026_v54 = vld [vmem:[%s5399_s11 + $0xc4] ss:$16 sps:$4 sm:$0xff]  }
 0x559   : > { %2861 = vmatprep.subr.bf16.mxu0 %v4020_v48  ;;  %2902 = vmatprep.subr.bf16.mxu1 %v4022_v56  ;;  %v4028_v29 = vld [vmem:[%s5399_s11 + $0xcc] ss:$16 sps:$4 sm:$0xff]   ;;  %v4030_v58 = vld [vmem:[%s5399_s11 + $0xc0] ss:$16 sps:$4 sm:$0xff]   ;;  %v4031_v61 = vld [vmem:[%s5399_s11 + $0xc8] ss:$16 sps:$4 sm:$0xff]  }
 0x55a   : > { %2862 = vmatpush1.bf16.msra.mxu0 %v4024_v18  ;;  %2903 = vmatpush1.bf16.msra.mxu1 %v4025_v10  ;;  %v4032_v62 = vld [vmem:[%s5399_s11 + $0xa4] ss:$16 sps:$4 sm:$0xff]   ;;  %v4034_v17 = vld [vmem:[%s5399_s11 + $0xac] ss:$16 sps:$4 sm:$0xff]   ;;  %v4036_v23 = vld [vmem:[%s5399_s11 + $0xa0] ss:$16 sps:$4 sm:$0xff]  }
 0x55b   : > { %2863 = vmatprep.subr.bf16.mxu0 %v4026_v54  ;;  %2904 = vmatprep.subr.bf16.mxu1 %v4028_v29  ;;  %v4037_v20 = vld [vmem:[%s5399_s11 + $0xa8] ss:$16 sps:$4 sm:$0xff]   ;;  %v4038_v47 = vld [vmem:[%s5399_s11 + $0x84] ss:$16 sps:$4 sm:$0xff]   ;;  %v4040_v6 = vld [vmem:[%s5399_s11 + $0x8c] ss:$16 sps:$4 sm:$0xff]  }
 0x55c   : > { %v4042_v14 = vld [vmem:[%s5399_s11 + $0x80] ss:$16 sps:$4 sm:$0xff]   ;;  %v4043_v3 = vld [vmem:[%s5399_s11 + $0x88] ss:$16 sps:$4 sm:$0xff]   ;;  %v4044_v51 = vld [vmem:[%s5399_s11 + $0x64] ss:$16 sps:$4 sm:$0xff]  }
 0x55d   : > { %v4046_v7 = vld [vmem:[%s5399_s11 + $0x6c] ss:$16 sps:$4 sm:$0xff]   ;;  %v4048_v50 = vld [vmem:[%s5399_s11 + $0x60] ss:$16 sps:$4 sm:$0xff]   ;;  %v4049_v60 = vld [vmem:[%s5399_s11 + $0x68] ss:$16 sps:$4 sm:$0xff]  }
 0x55e   : > { %2864 = vmatpush1.bf16.msra.mxu0 %v4030_v58  ;;  %2905 = vmatpush1.bf16.msra.mxu1 %v4031_v61  ;;  %v4050_v4 = vld [vmem:[%s5399_s11 + $0x44] ss:$16 sps:$4 sm:$0xff]   ;;  %v4052_v49 = vld [vmem:[%s5399_s11 + $0x4c] ss:$16 sps:$4 sm:$0xff]   ;;  %v4054_v22 = vld [vmem:[%s5399_s11 + $0x40] ss:$16 sps:$4 sm:$0xff]  }
 0x55f   : > { %2865 = vmatprep.subr.bf16.mxu0 %v4032_v62  ;;  %2906 = vmatprep.subr.bf16.mxu1 %v4034_v17  ;;  %v4055_v27 = vld [vmem:[%s5399_s11 + $0x48] ss:$16 sps:$4 sm:$0xff]   ;;  %v4056_v9 = vld [vmem:[%s5399_s11 + $0x24] ss:$16 sps:$4 sm:$0xff]   ;;  %v4058_v19 = vld [vmem:[%s5399_s11 + $0x2c] ss:$16 sps:$4 sm:$0xff]  }
 0x560   : > { %v4060_v25 = vld [vmem:[%s5399_s11 + $0x20] ss:$16 sps:$4 sm:$0xff]   ;;  %v4061_v32 = vld [vmem:[%s5399_s11 + $0x28] ss:$16 sps:$4 sm:$0xff]   ;;  %v4062_v5 = vld [vmem:[%s5399_s11 + $0x4] ss:$16 sps:$4 sm:$0xff]  }
 0x561   : > { %v4064_v40 = vld [vmem:[%s5399_s11 + $0xc] ss:$16 sps:$4 sm:$0xff]   ;;  %v4066_v0 = vld [vmem:[%s5399_s11] ss:$16 sps:$4 sm:$0xff]   ;;  %v4067_v39 = vld [vmem:[%s5399_s11 + $0x8] ss:$16 sps:$4 sm:$0xff]  }
 0x562   : > { %2866 = vmatpush1.bf16.msra.mxu0 %v4036_v23  ;;  %2907 = vmatpush1.bf16.msra.mxu1 %v4037_v20  ;;  %v2645_v45 = vld [vmem:[#allocation2] sm:$0x3]  ;;  %v4068_v16 = vld [vmem:[%s5417_s23 + $0x78] sm:$0xff]   ;;  %v4072_v46 = vld [vmem:[%s5417_s23 + $0x70] sm:$0xff]   ;;  %v2695_v61 = vsub.s32 3, %v4724_v28 }
 0x563   : > { %2867 = vmatprep.subr.bf16.mxu0 %v4038_v47  ;;  %2908 = vmatprep.subr.bf16.mxu1 %v4040_v6  ;;  %v4069_v36 = vld [vmem:[%s5417_s23 + $0xf8] sm:$0xff]   ;;  %v2646_v37 = vpack.c.bf16 %v2645_v45, %v2645_v45  ;;  %v4073_v2 = vld [vmem:[%s5417_s23 + $0xf0] sm:$0xff]   ;;  %v4076_v63 = vld [vmem:[%s5417_s23 + $0x68] sm:$0xff]  }
 0x564   : > { %v4070_v44 = vld [vmem:[%s5417_s23 + $0x38] sm:$0xff]   ;;  %v4074_v21 = vld [vmem:[%s5417_s23 + $0x30] sm:$0xff]   ;;  %v4077_v35 = vld [vmem:[%s5417_s23 + $0xe8] sm:$0xff]  }
 0x565   : > { %v4071_v12 = vld [vmem:[%s5417_s23 + $0xb8] sm:$0xff]   ;;  %v4075_v52 = vld [vmem:[%s5417_s23 + $0xb0] sm:$0xff]   ;;  %v4078_v53 = vld [vmem:[%s5417_s23 + $0x28] sm:$0xff]  }
 0x566   : > { %2868 = vmatpush1.bf16.msra.mxu0 %v4042_v14  ;;  %2909 = vmatpush1.bf16.msra.mxu1 %v4043_v3  ;;  %v4079_v11 = vld [vmem:[%s5417_s23 + $0xa8] sm:$0xff]   ;;  %v4080_v42 = vld [vmem:[%s5417_s23 + $0x60] sm:$0xff]   ;;  %v4084_v41 = vld [vmem:[%s5417_s23 + $0x58] sm:$0xff]  }
 0x567   : > { %2869 = vmatprep.subr.bf16.mxu0 %v4044_v51  ;;  %2910 = vmatprep.subr.bf16.mxu1 %v4046_v7  ;;  %v4081_v38 = vld [vmem:[%s5417_s23 + $0xe0] sm:$0xff]   ;;  %v4085_v26 = vld [vmem:[%s5417_s23 + $0xd8] sm:$0xff]   ;;  %v4088_v8 = vld [vmem:[%s5417_s23 + $0x50] sm:$0xff]  }
 0x568   : > { %v4082_v57 = vld [vmem:[%s5417_s23 + $0x20] sm:$0xff]   ;;  %v4086_v59 = vld [vmem:[%s5417_s23 + $0x18] sm:$0xff]   ;;  %v4089_v15 = vld [vmem:[%s5417_s23 + $0xd0] sm:$0xff]  }
 0x569   : > { %v4083_v55 = vld [vmem:[%s5417_s23 + $0xa0] sm:$0xff]   ;;  %v4087_v43 = vld [vmem:[%s5417_s23 + $0x98] sm:$0xff]   ;;  %v4090_v30 = vld [vmem:[%s5417_s23 + $0x10] sm:$0xff]  }
 0x56a   : > { %2870 = vmatpush1.bf16.msra.mxu0 %v4048_v50  ;;  %2911 = vmatpush1.bf16.msra.mxu1 %v4049_v60  ;;  %v4091_v1 = vld [vmem:[%s5417_s23 + $0x90] sm:$0xff]   ;;  %v4092_v13 = vld [vmem:[%s5417_s23 + $0x48] sm:$0xff]   ;;  %v4096_v18 = vld [vmem:[%s5417_s23 + $0x40] sm:$0xff]  }
 0x56b   : > { %2871 = vmatprep.subr.bf16.mxu0 %v4050_v4  ;;  %2912 = vmatprep.subr.bf16.mxu1 %v4052_v49  ;;  %v4093_v48 = vld [vmem:[%s5417_s23 + $0xc8] sm:$0xff]   ;;  %v4097_v10 = vld [vmem:[%s5417_s23 + $0xc0] sm:$0xff]  }
 0x56c   : > { %v4094_v56 = vld [vmem:[%s5417_s23 + $0x8] sm:$0xff]   ;;  %v4098_v54 = vld [vmem:[%s5417_s23] sm:$0xff]  }
 0x56d   : > { %v4095_v24 = vld [vmem:[%s5417_s23 + $0x88] sm:$0xff]   ;;  %v4099_v29 = vld [vmem:[%s5417_s23 + $0x80] sm:$0xff]  }
 0x56e   : > { %2872 = vmatpush1.bf16.msra.mxu0 %v4054_v22  ;;  %2913 = vmatpush1.bf16.msra.mxu1 %v4055_v27  ;;  %v2679_v58 = vld [vmem:[%s5418_s12] sm:$0xf] }
 0x56f   : > { %2873 = vmatprep.subr.bf16.mxu0 %v4056_v9  ;;  %2914 = vmatprep.subr.bf16.mxu1 %v4058_v19  ;;  %v2684_v62 = vrot.slane %v2679_v58, %v925_v33  ;;  %v2692_v17 = vrot.slane %v2679_v58, %v1285_v34  ;;  %v2688_v23 = vrot.slane %v2679_v58, %v1089_v31 }
 0x570   : > { %v2696_v20 = vrot.slane %v2679_v58, %v2695_v61 }
 0x572   : > { %2874 = vmatpush1.bf16.msra.mxu0 %v4060_v25  ;;  %2915 = vmatpush1.bf16.msra.mxu1 %v4061_v32 }
 0x573   : > { %2875 = vmatprep.subr.bf16.mxu0 %v4062_v5  ;;  %2916 = vmatprep.subr.bf16.mxu1 %v4064_v40 }
 0x576   : > { %2876 = vmatpush1.bf16.msra.mxu0 %v4066_v0  ;;  %2917 = vmatpush1.bf16.msra.mxu1 %v4067_v39  ;;  %v3527_v0 = vld [vmem:[%s5419_s27] ss:$0 sm:$0xff] }
 0x577   : > { %3649 = vmatprep.subr.bf16.mxu0 %v4068_v16  ;;  %3671 = vmatprep.subr.bf16.mxu1 %v4069_v36 }
 0x579   : > { %2894 = vmatmul.mubr.bf16.vlgmr.msra.gmra.mxu0 %v2646_v37  ;;  %2935 = vmatmul.mubr.bf16.vlgmr.msra.gmra.mxu1 %v2646_v37 }
 0x57a   : > { %3650 = vmatpush3.bf16.msra.mxu0 %v4070_v44  ;;  %3672 = vmatpush3.bf16.msra.mxu1 %v4071_v12 }
 0x57b   : > { %3651 = vmatprep.subr.bf16.mxu0 %v4072_v46  ;;  %3673 = vmatprep.subr.bf16.mxu1 %v4073_v2 }
 0x57e   : > { %3652 = vmatpush3.bf16.msra.mxu0 %v4074_v21  ;;  %3674 = vmatpush3.bf16.msra.mxu1 %v4075_v52 }
 0x57f   : > { %3653 = vmatprep.subr.bf16.mxu0 %v4076_v63  ;;  %3675 = vmatprep.subr.bf16.mxu1 %v4077_v35 }
 0x582   : > { %3654 = vmatpush3.bf16.msra.mxu0 %v4078_v53  ;;  %3676 = vmatpush3.bf16.msra.mxu1 %v4079_v11 }
 0x583   : > { %3655 = vmatprep.subr.bf16.mxu0 %v4080_v42  ;;  %3677 = vmatprep.subr.bf16.mxu1 %v4081_v38 }
 0x586   : > { %3656 = vmatpush3.bf16.msra.mxu0 %v4082_v57  ;;  %3678 = vmatpush3.bf16.msra.mxu1 %v4083_v55 }
 0x587   : > { %3657 = vmatprep.subr.bf16.mxu0 %v4084_v41  ;;  %3679 = vmatprep.subr.bf16.mxu1 %v4085_v26 }
 0x58a   : > { %3658 = vmatpush3.bf16.msra.mxu0 %v4086_v59  ;;  %3680 = vmatpush3.bf16.msra.mxu1 %v4087_v43 }
 0x58b   : > { %3659 = vmatprep.subr.bf16.mxu0 %v4088_v8  ;;  %3681 = vmatprep.subr.bf16.mxu1 %v4089_v15 }
 0x58e   : > { %3660 = vmatpush3.bf16.msra.mxu0 %v4090_v30  ;;  %3682 = vmatpush3.bf16.msra.mxu1 %v4091_v1 }
 0x58f   : > { %3661 = vmatprep.subr.bf16.mxu0 %v4092_v13  ;;  %3683 = vmatprep.subr.bf16.mxu1 %v4093_v48 }
 0x592   : > { %3662 = vmatpush3.bf16.msra.mxu0 %v4094_v56  ;;  %3684 = vmatpush3.bf16.msra.mxu1 %v4095_v24 }
 0x593   : > { %3663 = vmatprep.subr.bf16.mxu0 %v4096_v18  ;;  %3685 = vmatprep.subr.bf16.mxu1 %v4097_v10 }
 0x596   : > { %3664 = vmatpush3.bf16.msra.mxu0 %v4098_v54  ;;  %3686 = vmatpush3.bf16.msra.mxu1 %v4099_v29 }
 0x639   : > { %v2895_v47 = vpop.f32.mrf.mxu0  ;;  %v2936_v6 = vpop.f32.mrf.mxu1 }
 0x63a   : > { %v2896_v14 = vadd.f32 %v2895_v47, %v2684_v62  ;;  %v2937_v3 = vadd.f32 %v2936_v6, %v2692_v17 }
 0x63b   : > { %v2897_v51 = vpop.f32.mrf.mxu0  ;;  %v2938_v7 = vpop.f32.mrf.mxu1 }
 0x63c   : > { %v2945_v50 = vmax.f32 %v2937_v3, 0.0  ;;  %v2898_v60 = vadd.f32 %v2897_v51, %v2688_v23  ;;  %v2939_v4 = vadd.f32 %v2938_v7, %v2696_v20  ;;  %v2943_v49 = vmax.f32 %v2896_v14, 0.0 }
 0x63d   : > { %v2899_v22 = vpop.f32.mrf.mxu0  ;;  %v2940_v27 = vpop.f32.mrf.mxu1 }
 0x63e   : > { %v2944_v33 = vmax.f32 %v2898_v60, 0.0  ;;  %v2946_v9 = vmax.f32 %v2939_v4, 0.0  ;;  %v2949_v19 = vpack.c.bf16 %v2945_v50, %v2945_v50  ;;  %v2947_v32 = vpack.c.bf16 %v2943_v49, %v2943_v49 }
 0x63f   : > { %v2900_v34 = vpop.f32.mrf.mxu0  ;;  %v2941_v25 = vpop.f32.mrf.mxu1 }
 0x640   : > { %v2948_v28 = vpack.c.bf16 %v2944_v33, %v2944_v33  ;;  %v2950_v31 = vpack.c.bf16 %v2946_v9, %v2946_v9 }
 0x642   : > { %3246 = vmatprep.mubr.bf16.mxu0 %v2948_v28  ;;  %3286 = vmatprep.mubr.bf16.mxu1 %v2950_v31 }
 0x643   : > { %3247 = vmatmul.mubr.bf16.vlgmr.msra.gmra.mxu0 %v2947_v32  ;;  %3287 = vmatmul.mubr.bf16.vlgmr.msra.gmra.mxu1 %v2949_v19 }
 0x703   : > { %v3665_v5 = vpop.f32.mrf.mxu0  ;;  %v3687_v40 = vpop.f32.mrf.mxu1 }
 0x705   : > { %v3666_v39 = vpop.f32.mrf.mxu0  ;;  %v3688_v45 = vpop.f32.mrf.mxu1 }
 0x706   : > { %v3667_v16 = vadd.f32 %v3666_v39, %v3665_v5  ;;  %v3689_v12 = vadd.f32 %v3688_v45, %v3687_v40 }
 0x707   : > { %v3668_v36 = vpop.f32.mrf.mxu0  ;;  %v3690_v44 = vpop.f32.mrf.mxu1 }
 0x708   : > { %v3249_v37 = vadd.f32 %v3667_v16, %v3527_v0 }
 0x709   : > { %v3669_v46 = vpop.f32.mrf.mxu0  ;;  %v3691_v2 = vpop.f32.mrf.mxu1 }
 0x70a   : > { %v3289_v21 = vadd.f32 %v3689_v12, %v3249_v37 }
 0x70c   : > { %3294 = vst [vmem:[#allocation12] sm:$0x3] %v3289_v21 }
 0x70d PF: > { %s5420_s17 = sadd.s32 4294967295, %s4282_s22   ;;  %s4295_s16 = smov [#allocation12]  }
 0x70e   : > { %p5358_p8 = scmp.eq.s32.totalorder %s5420_s17, 1  ;;  %s3304_s15 = sshll.u32 %s4295_s16, 4  ;;  %s3305_s15 = int_to_ptr.vmem [resolvable:$true] %s3304_s15 }
 0x70f   : > { %s4204_s24 = scalar_lea.vmem %s3305_s15, 32  ;;  %p4211_p1 = scmp.lt.s32.totalorder %s3305_s15, %s3305_s15 }
 0x710   : > { %p4205_p10 = scmp.ne.s32.totalorder %s3305_s15, %s4204_s24  ;;  %p4212_p2 = scmp.lt.s32.totalorder %s4204_s24, %s4204_s24 }
 0x712   : > { %p4206_p11 = pnand %p4205_p10, %p5358_p8  ;;  %p4213_p4 = por %p4212_p2, %p4211_p1 }
 0x714   : > { %p4207_p0 = pneg %p4206_p11 }
 0x716   : > { %p4214_p5 = pnand %p4213_p4, %p4207_p0 }
 0x718   : > { %4217 = shalt.err (!%p4214_p5)
}
 0x719   : > { %s5422_s18 = sld [smem:[#allocation22_spill]] }
 0x71f   : > { %3878 = dma.vmem_to_hbm [thread:$0]  (%p5358_p8), %s3305_s15, 32, %s5422_s18, [#allocation6]  }
 0x720   : > { %4261 = dma.done.wait (%p5358_p8), [#allocation6], 32  }
 0x721   : > { %4263 = vsyncadd (%p5358_p8), [#allocation6], 4294967264 }
 0x722 PF: > { %s29_s22 = sadd.s32 1, %s4282_s22   ;;  %s5423_s28 = sld [smem:[#allocation18_spill]] }
 0x723   : > { %p26_p6 = scmp.ge.s32.totalorder %s29_s22, 4   ;;  %s5424_s29 = sld [smem:[#allocation17_spill]] }
 0x724   : > { %s5425_s18 = smov %s4270_s19  ;;  %s5427_s20 = smov %s4278_s21 }
 0x725   :  { %28 = sbr.rel (!%p26_p6) target bundleno = 11 (0xb), region = 176 }
 0x728   : > { %s5426_s19 = smov %s5423_s28 }
 0x729   : > { %s5428_s21 = smov %s5424_s29 }
 0x72a   :  { %3317 = vsyncpa [#allocation5], 1 }
 0x72b   :  { %3319 = vsyncpa [#allocation5 + $0x1], 1 }
 0x72c   :  { %3320 = vsyncpa [#allocation8], 1 }
 0x72d   :  { %3321 = vsyncpa [#allocation11], 1 }
 0x72e   :  { %3322 = vsyncpa [#allocation6], 1 }
 0x72f   :  { %3324 = vsyncpa [#allocation6 + $0x1], 1 }

</bundles_post_ra>
